<compile_context>
chip_gen: v5e
topology: v5e:2x2
jax: 0.10.0
libtpu: 0.0.40
codegen_flags: <defaults>
</compile_context>

<pallas_src>
import functools
import math

import jax
import jax.numpy as jnp
from jax.experimental import pallas as pl
from jax.experimental.pallas import tpu as pltpu


MLP_HIDDEN = 1024
OUT_PAD = 128  # final Linear output width padded to one full lane tile


def lstm_mlp_kernel(seq_ref, tlast_ref,
                    wih_ref, whh_ref, b_ref,
                    w1_hbm, b1_ref, w2_hbm, b2_ref,
                    out_ref,
                    w1_vmem, w2_vmem, dma_sem,
                    *, batch, seq_len):
    """Fused LSTM + residual-add (last step) + 2-layer MLP.

    seq_ref   : (T*B, I)      f32   time-major (row t*B + b == seq[b, t])
    tlast_ref : (B, H)        f32   (== t[:, -1, :])
    wih_ref   : (I, 4H)       f32   gate columns packed [i, f, o, g]
    whh_ref   : (H, 4H)       bf16  gate columns packed [i, f, o, g]
    b_ref     : (1, 4H)       f32   (b_ih + b_hh), same packing
    w1_hbm    : (H, 1024)     bf16  (HBM; DMA'd behind the recurrence)
    b1_ref    : (1, 1024)     f32
    w2_hbm    : (1024, OUT_PAD) bf16 (HBM; DMA'd behind the recurrence)
    b2_ref    : (1, OUT_PAD)  f32
    out_ref   : (B, OUT_PAD)  f32
    """
    B = batch
    T = seq_len
    H = whh_ref.shape[0]

    # --- Kick off MLP-weight DMAs now; they complete under the recurrence. ---
    w1_cp = pltpu.make_async_copy(w1_hbm, w1_vmem, dma_sem.at[0])
    w2_cp = pltpu.make_async_copy(w2_hbm, w2_vmem, dma_sem.at[1])
    w1_cp.start()
    w2_cp.start()

    # --- Hoisted input projection: one (T*B, I) @ (I, 4H) matmul + bias. ---
    gates_x = (jnp.dot(seq_ref[...], wih_ref[...],
                       preferred_element_type=jnp.float32)
               + b_ref[...])                                  # (T*B, 4H) f32

    h = jnp.zeros((B, H), jnp.float32)
    c = jnp.zeros((B, H), jnp.float32)

    # --- Statically unrolled recurrence (T is static and small).
    #     whh feeds the MXU straight from the VMEM ref each step (bf16). ---
    for t in range(T):
        gx_t = gates_x[t * B:(t + 1) * B, :]                  # contiguous static slice
        if t == 0:
            gates = gx_t                                      # h == 0 exactly at t=0
        else:
            gates = gx_t + jnp.dot(h.astype(jnp.bfloat16), whh_ref[...],
                                   preferred_element_type=jnp.float32)
        # Gates packed [i, f, o | g]: one sigmoid over 3H, one tanh over H.
        sig = jax.nn.sigmoid(gates[:, :3 * H])
        g_g = jnp.tanh(gates[:, 3 * H:])
        i_g = sig[:, 0:H]
        f_g = sig[:, H:2 * H]
        o_g = sig[:, 2 * H:3 * H]
        c = f_g * c + i_g * g_g
        h = o_g * jnp.tanh(c)

    # out = (lstm_out + t)[:, -1, :]
    h = h + tlast_ref[...]

    # --- MLP: Linear(H, 1024) -> ReLU -> Linear(1024, OUT_PAD).
    #     Wait on the hidden DMAs only now. bf16 MXU operands, f32 accum. ---
    w1_cp.wait()
    w2_cp.wait()
    hid = (jnp.dot(h.astype(jnp.bfloat16), w1_vmem[...],
                   preferred_element_type=jnp.float32) + b1_ref[...])
    hid = jnp.maximum(hid, 0.0)
    out_ref[...] = (jnp.dot(hid.astype(jnp.bfloat16), w2_vmem[...],
                            preferred_element_type=jnp.float32) + b2_ref[...])


@jax.jit
def _forward_padded(seq, t, kparams):
    """seq: (B, T, I) f32 (batch_first, like PyTorch); t: (B, T, H) f32.

    Returns the lane-padded (B, OUT_PAD) output; caller slices [:, :O].
    """
    B, T, I = seq.shape
    H = kparams["whh_t"].shape[0]

    # Time-major, lane-dense input: row t*B + b == seq[b, t].
    seq_tm = jnp.transpose(seq, (1, 0, 2)).reshape(T * B, I)
    t_last = t[:, -1, :]                                      # (B, H)

    kernel = functools.partial(lstm_mlp_kernel, batch=B, seq_len=T)
    vmem = pl.BlockSpec(memory_space=pltpu.MemorySpace.VMEM)
    hbm = pl.BlockSpec(memory_space=pl.ANY)

    return pl.pallas_call(
        kernel,
        out_shape=jax.ShapeDtypeStruct((B, OUT_PAD), jnp.float32),
        in_specs=[vmem, vmem,            # seq_tm, t_last
                  vmem, vmem, vmem,      # wih_t, whh_t, b_gates
                  hbm, vmem,             # w1_t (HBM), b1
                  hbm, vmem],            # w2_t (HBM), b2
        out_specs=vmem,
        scratch_shapes=[
            pltpu.VMEM((H, MLP_HIDDEN), jnp.bfloat16),        # w1 landing buffer
            pltpu.VMEM((MLP_HIDDEN, OUT_PAD), jnp.bfloat16),  # w2 landing buffer
            pltpu.SemaphoreType.DMA((2,)),
        ],
    )(seq_tm, t_last,
      kparams["wih_t"], kparams["whh_t"], kparams["b_gates"],
      kparams["w1_t"], kparams["b1"], kparams["w2_t"], kparams["b2"])


def mymodel2_forward(seq, t, kparams, output_size):
    return _forward_padded(seq, t, kparams)[:, :output_size]


def init_canonical_params(key, input_size=4, hidden_size=128, output_size=4):
    """Synthetic parameters in canonical PyTorch packing ([i, f, g, o] rows)."""
    ks = jax.random.split(key, 8)
    H, I, O = hidden_size, input_size, output_size
    s = 1.0 / math.sqrt(H)

    w_ih = jax.random.uniform(ks[0], (4 * H, I), jnp.float32, -s, s)
    w_hh = jax.random.uniform(ks[1], (4 * H, H), jnp.float32, -s, s)
    b_ih = jax.random.uniform(ks[2], (4 * H,), jnp.float32, -s, s)
    b_hh = jax.random.uniform(ks[3], (4 * H,), jnp.float32, -s, s)

    s1 = 1.0 / math.sqrt(H)
    w1 = jax.random.uniform(ks[4], (MLP_HIDDEN, H), jnp.float32, -s1, s1)
    b1 = jax.random.uniform(ks[5], (MLP_HIDDEN,), jnp.float32, -s1, s1)
    s2 = 1.0 / math.sqrt(float(MLP_HIDDEN))
    w2 = jax.random.uniform(ks[6], (O, MLP_HIDDEN), jnp.float32, -s2, s2)
    b2 = jax.random.uniform(ks[7], (O,), jnp.float32, -s2, s2)

    return dict(w_ih=w_ih, w_hh=w_hh, b_ih=b_ih, b_hh=b_hh,
                w1=w1, b1=b1, w2=w2, b2=b2)


def prepare_kernel_params(p):
    """Repack canonical PyTorch params for the kernel.

    * Gate rows reordered [i, f, g, o] -> [i, f, o, g] (contiguous sigmoid block).
    * Weights transposed so every matmul is (rows, K) @ (K, cols).
    * MXU weight operands (whh, w1, w2) pre-cast to bf16; biases stay f32.
    * Final Linear padded to OUT_PAD output columns (lane-dense store).
    """
    H4, _ = p["w_ih"].shape
    H = H4 // 4
    O = p["w2"].shape[0]
    perm = jnp.concatenate([jnp.arange(0, 2 * H),       # i, f
                            jnp.arange(3 * H, 4 * H),   # o
                            jnp.arange(2 * H, 3 * H)])  # g
    w_ih = p["w_ih"][perm]
    w_hh = p["w_hh"][perm]
    b = (p["b_ih"] + p["b_hh"])[perm]

    w2_t = jnp.zeros((MLP_HIDDEN, OUT_PAD), jnp.float32).at[:, :O].set(p["w2"].T)
    b2 = jnp.zeros((1, OUT_PAD), jnp.float32).at[:, :O].set(p["b2"][None, :])

    return {
        "wih_t": w_ih.T.astype(jnp.float32),            # (I, 4H) f32 (one-shot, K=4)
        "whh_t": w_hh.T.astype(jnp.bfloat16),           # (H, 4H) bf16
        "b_gates": b.reshape(1, 4 * H).astype(jnp.float32),
        "w1_t": p["w1"].T.astype(jnp.bfloat16),         # (H, 1024) bf16
        "b1": p["b1"].reshape(1, -1).astype(jnp.float32),
        "w2_t": w2_t.astype(jnp.bfloat16),              # (1024, OUT_PAD) bf16
        "b2": b2,                                       # (1, OUT_PAD) f32
    }


def matched_reference_forward(seq, t, kp, output_size):
    """Pure-JAX forward with the SAME mixed precision as the kernel
    (bf16 MXU operands, f32 accumulation/state) — tight correctness check."""
    B, T, I = seq.shape
    H = kp["whh_t"].shape[0]
    gates_x = (seq.reshape(B * T, I) @ kp["wih_t"]).reshape(B, T, 4 * H) + kp["b_gates"]
    h = jnp.zeros((B, H), jnp.float32)
    c = jnp.zeros((B, H), jnp.float32)
    for step in range(T):
        gates = gates_x[:, step, :]
        if step > 0:
            gates = gates + jnp.dot(h.astype(jnp.bfloat16), kp["whh_t"],
                                    preferred_element_type=jnp.float32)
        i_g = jax.nn.sigmoid(gates[:, 0:H])
        f_g = jax.nn.sigmoid(gates[:, H:2 * H])
        o_g = jax.nn.sigmoid(gates[:, 2 * H:3 * H])
        g_g = jnp.tanh(gates[:, 3 * H:])
        c = f_g * c + i_g * g_g
        h = o_g * jnp.tanh(c)
    h = h + t[:, -1, :]
    hid = jnp.maximum(jnp.dot(h.astype(jnp.bfloat16), kp["w1_t"],
                              preferred_element_type=jnp.float32) + kp["b1"], 0.0)
    out = jnp.dot(hid.astype(jnp.bfloat16), kp["w2_t"],
                  preferred_element_type=jnp.float32) + kp["b2"]
    return out[:, :output_size]


def reference_forward(seq, t, p):
    """Pure-f32 JAX reference with canonical PyTorch gate order [i, f, g, o]."""
    B, T, I = seq.shape
    H = p["w_hh"].shape[1]
    wih_t = p["w_ih"].T
    whh_t = p["w_hh"].T
    b = (p["b_ih"] + p["b_hh"]).reshape(1, 4 * H)
    h = jnp.zeros((B, H), jnp.float32)
    c = jnp.zeros((B, H), jnp.float32)
    outs = []
    for step in range(T):
        gates = seq[:, step, :] @ wih_t + h @ whh_t + b
        i_g = jax.nn.sigmoid(gates[:, 0 * H:1 * H])
        f_g = jax.nn.sigmoid(gates[:, 1 * H:2 * H])
        g_g = jnp.tanh(gates[:, 2 * H:3 * H])
        o_g = jax.nn.sigmoid(gates[:, 3 * H:4 * H])
        c = f_g * c + i_g * g_g
        h = o_g * jnp.tanh(c)
        outs.append(h)
    out = jnp.stack(outs, axis=1)             # (B, T, H)
    out = out + t
    out = out[:, -1, :]
    hid = jnp.maximum(out @ p["w1"].T + p["b1"], 0.0)
    return hid @ p["w2"].T + p["b2"]


if __name__ == "__main__":
    B, T, I, H, O = 2, 8, 4, 128, 4

    key = jax.random.PRNGKey(0)
    k_seq, k_t, k_param = jax.random.split(key, 3)

    seq = jax.random.normal(k_seq, (B, T, I), jnp.float32)
    t_in = jax.random.normal(k_t, (B, T, H), jnp.float32)

    canon = init_canonical_params(k_param, I, H, O)
    kparams = prepare_kernel_params(canon)

    out = mymodel2_forward(seq, t_in, kparams, O)
    out = jax.block_until_ready(out)
    assert out.shape == (B, O)

    # Tight check vs. a mixed-precision-matched reference (validates kernel logic).
    ref_matched = matched_reference_forward(seq, t_in, kparams, O)
    assert jnp.allclose(out, ref_matched, atol=5e-3, rtol=5e-3), \
        float(jnp.max(jnp.abs(out - ref_matched)))

    # Loose check vs. the pure-f32 PyTorch-semantics reference (bf16 MXU operands).
    ref_f32 = reference_forward(seq, t_in, canon)
    assert jnp.allclose(out, ref_f32, atol=5e-2, rtol=5e-2), \
        float(jnp.max(jnp.abs(out - ref_f32)))

    print("KERNEL_OK")
</pallas_src>

<mosaic_0001>
module attributes {stable_mosaic.version = 11 : i64} {
  func.func @lstm_mlp_kernel(%arg0: memref<16x4xf32, #tpu.memory_space<vmem>>, %arg1: memref<2x128xf32, #tpu.memory_space<vmem>>, %arg2: memref<4x512xf32, #tpu.memory_space<vmem>>, %arg3: memref<128x512xbf16, #tpu.memory_space<vmem>>, %arg4: memref<1x512xf32, #tpu.memory_space<vmem>>, %arg5: memref<128x1024xbf16, #tpu.memory_space<any>>, %arg6: memref<1x1024xf32, #tpu.memory_space<vmem>>, %arg7: memref<1024x128xbf16, #tpu.memory_space<any>>, %arg8: memref<1x128xf32, #tpu.memory_space<vmem>>, %arg9: memref<2x128xf32, #tpu.memory_space<vmem>>, %arg10: memref<128x1024xbf16, #tpu.memory_space<vmem>>, %arg11: memref<1024x128xbf16, #tpu.memory_space<vmem>>, %arg12: memref<2x!tpu.dma_semaphore, #tpu.memory_space<semaphore_mem>>) attributes {dimension_semantics = [], scalar_prefetch = 0 : i64, scratch_operands = 3 : i64, tpu.core_type = #tpu.core_type<tc>} {
    %c0_i32 = arith.constant 0 : i32
    %0 = tpu.memref_slice %arg12[%c0_i32] : memref<2x!tpu.dma_semaphore, #tpu.memory_space<semaphore_mem>> -> memref<1x!tpu.dma_semaphore, #tpu.memory_space<semaphore_mem>>
    %1 = tpu.memref_squeeze %0 : memref<1x!tpu.dma_semaphore, #tpu.memory_space<semaphore_mem>> -> memref<!tpu.dma_semaphore, #tpu.memory_space<semaphore_mem>>
    tpu.enqueue_dma source(%arg5 : memref<128x1024xbf16, #tpu.memory_space<any>>) target(%arg10 : memref<128x1024xbf16, #tpu.memory_space<vmem>>) target_semaphore(%1 : memref<!tpu.dma_semaphore, #tpu.memory_space<semaphore_mem>>)
    %c1_i32 = arith.constant 1 : i32
    %2 = tpu.memref_slice %arg12[%c1_i32] : memref<2x!tpu.dma_semaphore, #tpu.memory_space<semaphore_mem>> -> memref<1x!tpu.dma_semaphore, #tpu.memory_space<semaphore_mem>>
    %3 = tpu.memref_squeeze %2 : memref<1x!tpu.dma_semaphore, #tpu.memory_space<semaphore_mem>> -> memref<!tpu.dma_semaphore, #tpu.memory_space<semaphore_mem>>
    tpu.enqueue_dma source(%arg7 : memref<1024x128xbf16, #tpu.memory_space<any>>) target(%arg11 : memref<1024x128xbf16, #tpu.memory_space<vmem>>) target_semaphore(%3 : memref<!tpu.dma_semaphore, #tpu.memory_space<semaphore_mem>>)
    %c0 = arith.constant 0 : index
    %c0_0 = arith.constant 0 : index
    %4 = vector.load %arg0[%c0, %c0_0] : memref<16x4xf32, #tpu.memory_space<vmem>>, vector<16x4xf32>
    %c0_1 = arith.constant 0 : index
    %c0_2 = arith.constant 0 : index
    %5 = vector.load %arg2[%c0_1, %c0_2] : memref<4x512xf32, #tpu.memory_space<vmem>>, vector<4x512xf32>
    %cst = arith.constant dense<0.000000e+00> : vector<16x512xf32>
    %6 = tpu.matmul %4, %5, %cst {dimension_numbers = #tpu.dot_dimension_numbers<[1], [0], [0], [1], [0, 0, 1, 1], [], []>} : vector<16x4xf32>, vector<4x512xf32>, vector<16x512xf32> -> vector<16x512xf32>
    %c0_3 = arith.constant 0 : index
    %c0_4 = arith.constant 0 : index
    %7 = vector.load %arg4[%c0_3, %c0_4] : memref<1x512xf32, #tpu.memory_space<vmem>>, vector<1x512xf32>
    %8 = vector.broadcast %7 : vector<1x512xf32> to vector<16x512xf32>
    %9 = arith.addf %6, %8 : vector<16x512xf32>
    %cst_5 = arith.constant 0.000000e+00 : f32
    %10 = vector.broadcast %cst_5 : f32 to vector<2x128xf32>
    %11 = vector.extract_strided_slice %9 {offsets = [0, 0], sizes = [2, 512], strides = [1, 1]} : vector<16x512xf32> to vector<2x512xf32>
    %12 = vector.extract_strided_slice %11 {offsets = [0, 0], sizes = [2, 384], strides = [1, 1]} : vector<2x512xf32> to vector<2x384xf32>
    %13 = arith.negf %12 : vector<2x384xf32>
    %14 = math.exp %13 : vector<2x384xf32>
    %cst_6 = arith.constant 1.000000e+00 : f32
    %15 = vector.broadcast %cst_6 : f32 to vector<2x384xf32>
    %16 = arith.addf %15, %14 : vector<2x384xf32>
    %17 = arith.divf %15, %16 : vector<2x384xf32>
    %18 = vector.extract_strided_slice %11 {offsets = [0, 384], sizes = [2, 128], strides = [1, 1]} : vector<2x512xf32> to vector<2x128xf32>
    %19 = math.tanh %18 : vector<2x128xf32>
    %20 = vector.extract_strided_slice %17 {offsets = [0, 0], sizes = [2, 128], strides = [1, 1]} : vector<2x384xf32> to vector<2x128xf32>
    %21 = vector.extract_strided_slice %17 {offsets = [0, 128], sizes = [2, 128], strides = [1, 1]} : vector<2x384xf32> to vector<2x128xf32>
    %22 = vector.extract_strided_slice %17 {offsets = [0, 256], sizes = [2, 128], strides = [1, 1]} : vector<2x384xf32> to vector<2x128xf32>
    %23 = arith.mulf %21, %10 : vector<2x128xf32>
    %24 = arith.mulf %20, %19 : vector<2x128xf32>
    %25 = arith.addf %23, %24 : vector<2x128xf32>
    %26 = math.tanh %25 : vector<2x128xf32>
    %27 = arith.mulf %22, %26 : vector<2x128xf32>
    %28 = vector.extract_strided_slice %9 {offsets = [2, 0], sizes = [2, 512], strides = [1, 1]} : vector<16x512xf32> to vector<2x512xf32>
    %29 = arith.truncf %27 : vector<2x128xf32> to vector<2x128xbf16>
    %c0_7 = arith.constant 0 : index
    %c0_8 = arith.constant 0 : index
    %30 = vector.load %arg3[%c0_7, %c0_8] : memref<128x512xbf16, #tpu.memory_space<vmem>>, vector<128x512xbf16>
    %cst_9 = arith.constant dense<0.000000e+00> : vector<2x512xf32>
    %31 = tpu.matmul %29, %30, %cst_9 {dimension_numbers = #tpu.dot_dimension_numbers<[1], [0], [0], [1], [0, 0, 1, 1], [], []>} : vector<2x128xbf16>, vector<128x512xbf16>, vector<2x512xf32> -> vector<2x512xf32>
    %32 = arith.addf %28, %31 : vector<2x512xf32>
    %33 = vector.extract_strided_slice %32 {offsets = [0, 0], sizes = [2, 384], strides = [1, 1]} : vector<2x512xf32> to vector<2x384xf32>
    %34 = arith.negf %33 : vector<2x384xf32>
    %35 = math.exp %34 : vector<2x384xf32>
    %cst_10 = arith.constant 1.000000e+00 : f32
    %36 = vector.broadcast %cst_10 : f32 to vector<2x384xf32>
    %37 = arith.addf %36, %35 : vector<2x384xf32>
    %38 = arith.divf %36, %37 : vector<2x384xf32>
    %39 = vector.extract_strided_slice %32 {offsets = [0, 384], sizes = [2, 128], strides = [1, 1]} : vector<2x512xf32> to vector<2x128xf32>
    %40 = math.tanh %39 : vector<2x128xf32>
    %41 = vector.extract_strided_slice %38 {offsets = [0, 0], sizes = [2, 128], strides = [1, 1]} : vector<2x384xf32> to vector<2x128xf32>
    %42 = vector.extract_strided_slice %38 {offsets = [0, 128], sizes = [2, 128], strides = [1, 1]} : vector<2x384xf32> to vector<2x128xf32>
    %43 = vector.extract_strided_slice %38 {offsets = [0, 256], sizes = [2, 128], strides = [1, 1]} : vector<2x384xf32> to vector<2x128xf32>
    %44 = arith.mulf %42, %25 : vector<2x128xf32>
    %45 = arith.mulf %41, %40 : vector<2x128xf32>
    %46 = arith.addf %44, %45 : vector<2x128xf32>
    %47 = math.tanh %46 : vector<2x128xf32>
    %48 = arith.mulf %43, %47 : vector<2x128xf32>
    %49 = vector.extract_strided_slice %9 {offsets = [4, 0], sizes = [2, 512], strides = [1, 1]} : vector<16x512xf32> to vector<2x512xf32>
    %50 = arith.truncf %48 : vector<2x128xf32> to vector<2x128xbf16>
    %c0_11 = arith.constant 0 : index
    %c0_12 = arith.constant 0 : index
    %51 = vector.load %arg3[%c0_11, %c0_12] : memref<128x512xbf16, #tpu.memory_space<vmem>>, vector<128x512xbf16>
    %cst_13 = arith.constant dense<0.000000e+00> : vector<2x512xf32>
    %52 = tpu.matmul %50, %51, %cst_13 {dimension_numbers = #tpu.dot_dimension_numbers<[1], [0], [0], [1], [0, 0, 1, 1], [], []>} : vector<2x128xbf16>, vector<128x512xbf16>, vector<2x512xf32> -> vector<2x512xf32>
    %53 = arith.addf %49, %52 : vector<2x512xf32>
    %54 = vector.extract_strided_slice %53 {offsets = [0, 0], sizes = [2, 384], strides = [1, 1]} : vector<2x512xf32> to vector<2x384xf32>
    %55 = arith.negf %54 : vector<2x384xf32>
    %56 = math.exp %55 : vector<2x384xf32>
    %cst_14 = arith.constant 1.000000e+00 : f32
    %57 = vector.broadcast %cst_14 : f32 to vector<2x384xf32>
    %58 = arith.addf %57, %56 : vector<2x384xf32>
    %59 = arith.divf %57, %58 : vector<2x384xf32>
    %60 = vector.extract_strided_slice %53 {offsets = [0, 384], sizes = [2, 128], strides = [1, 1]} : vector<2x512xf32> to vector<2x128xf32>
    %61 = math.tanh %60 : vector<2x128xf32>
    %62 = vector.extract_strided_slice %59 {offsets = [0, 0], sizes = [2, 128], strides = [1, 1]} : vector<2x384xf32> to vector<2x128xf32>
    %63 = vector.extract_strided_slice %59 {offsets = [0, 128], sizes = [2, 128], strides = [1, 1]} : vector<2x384xf32> to vector<2x128xf32>
    %64 = vector.extract_strided_slice %59 {offsets = [0, 256], sizes = [2, 128], strides = [1, 1]} : vector<2x384xf32> to vector<2x128xf32>
    %65 = arith.mulf %63, %46 : vector<2x128xf32>
    %66 = arith.mulf %62, %61 : vector<2x128xf32>
    %67 = arith.addf %65, %66 : vector<2x128xf32>
    %68 = math.tanh %67 : vector<2x128xf32>
    %69 = arith.mulf %64, %68 : vector<2x128xf32>
    %70 = vector.extract_strided_slice %9 {offsets = [6, 0], sizes = [2, 512], strides = [1, 1]} : vector<16x512xf32> to vector<2x512xf32>
    %71 = arith.truncf %69 : vector<2x128xf32> to vector<2x128xbf16>
    %c0_15 = arith.constant 0 : index
    %c0_16 = arith.constant 0 : index
    %72 = vector.load %arg3[%c0_15, %c0_16] : memref<128x512xbf16, #tpu.memory_space<vmem>>, vector<128x512xbf16>
    %cst_17 = arith.constant dense<0.000000e+00> : vector<2x512xf32>
    %73 = tpu.matmul %71, %72, %cst_17 {dimension_numbers = #tpu.dot_dimension_numbers<[1], [0], [0], [1], [0, 0, 1, 1], [], []>} : vector<2x128xbf16>, vector<128x512xbf16>, vector<2x512xf32> -> vector<2x512xf32>
    %74 = arith.addf %70, %73 : vector<2x512xf32>
    %75 = vector.extract_strided_slice %74 {offsets = [0, 0], sizes = [2, 384], strides = [1, 1]} : vector<2x512xf32> to vector<2x384xf32>
    %76 = arith.negf %75 : vector<2x384xf32>
    %77 = math.exp %76 : vector<2x384xf32>
    %cst_18 = arith.constant 1.000000e+00 : f32
    %78 = vector.broadcast %cst_18 : f32 to vector<2x384xf32>
    %79 = arith.addf %78, %77 : vector<2x384xf32>
    %80 = arith.divf %78, %79 : vector<2x384xf32>
    %81 = vector.extract_strided_slice %74 {offsets = [0, 384], sizes = [2, 128], strides = [1, 1]} : vector<2x512xf32> to vector<2x128xf32>
    %82 = math.tanh %81 : vector<2x128xf32>
    %83 = vector.extract_strided_slice %80 {offsets = [0, 0], sizes = [2, 128], strides = [1, 1]} : vector<2x384xf32> to vector<2x128xf32>
    %84 = vector.extract_strided_slice %80 {offsets = [0, 128], sizes = [2, 128], strides = [1, 1]} : vector<2x384xf32> to vector<2x128xf32>
    %85 = vector.extract_strided_slice %80 {offsets = [0, 256], sizes = [2, 128], strides = [1, 1]} : vector<2x384xf32> to vector<2x128xf32>
    %86 = arith.mulf %84, %67 : vector<2x128xf32>
    %87 = arith.mulf %83, %82 : vector<2x128xf32>
    %88 = arith.addf %86, %87 : vector<2x128xf32>
    %89 = math.tanh %88 : vector<2x128xf32>
    %90 = arith.mulf %85, %89 : vector<2x128xf32>
    %91 = vector.extract_strided_slice %9 {offsets = [8, 0], sizes = [2, 512], strides = [1, 1]} : vector<16x512xf32> to vector<2x512xf32>
    %92 = arith.truncf %90 : vector<2x128xf32> to vector<2x128xbf16>
    %c0_19 = arith.constant 0 : index
    %c0_20 = arith.constant 0 : index
    %93 = vector.load %arg3[%c0_19, %c0_20] : memref<128x512xbf16, #tpu.memory_space<vmem>>, vector<128x512xbf16>
    %cst_21 = arith.constant dense<0.000000e+00> : vector<2x512xf32>
    %94 = tpu.matmul %92, %93, %cst_21 {dimension_numbers = #tpu.dot_dimension_numbers<[1], [0], [0], [1], [0, 0, 1, 1], [], []>} : vector<2x128xbf16>, vector<128x512xbf16>, vector<2x512xf32> -> vector<2x512xf32>
    %95 = arith.addf %91, %94 : vector<2x512xf32>
    %96 = vector.extract_strided_slice %95 {offsets = [0, 0], sizes = [2, 384], strides = [1, 1]} : vector<2x512xf32> to vector<2x384xf32>
    %97 = arith.negf %96 : vector<2x384xf32>
    %98 = math.exp %97 : vector<2x384xf32>
    %cst_22 = arith.constant 1.000000e+00 : f32
    %99 = vector.broadcast %cst_22 : f32 to vector<2x384xf32>
    %100 = arith.addf %99, %98 : vector<2x384xf32>
    %101 = arith.divf %99, %100 : vector<2x384xf32>
    %102 = vector.extract_strided_slice %95 {offsets = [0, 384], sizes = [2, 128], strides = [1, 1]} : vector<2x512xf32> to vector<2x128xf32>
    %103 = math.tanh %102 : vector<2x128xf32>
    %104 = vector.extract_strided_slice %101 {offsets = [0, 0], sizes = [2, 128], strides = [1, 1]} : vector<2x384xf32> to vector<2x128xf32>
    %105 = vector.extract_strided_slice %101 {offsets = [0, 128], sizes = [2, 128], strides = [1, 1]} : vector<2x384xf32> to vector<2x128xf32>
    %106 = vector.extract_strided_slice %101 {offsets = [0, 256], sizes = [2, 128], strides = [1, 1]} : vector<2x384xf32> to vector<2x128xf32>
    %107 = arith.mulf %105, %88 : vector<2x128xf32>
    %108 = arith.mulf %104, %103 : vector<2x128xf32>
    %109 = arith.addf %107, %108 : vector<2x128xf32>
    %110 = math.tanh %109 : vector<2x128xf32>
    %111 = arith.mulf %106, %110 : vector<2x128xf32>
    %112 = vector.extract_strided_slice %9 {offsets = [10, 0], sizes = [2, 512], strides = [1, 1]} : vector<16x512xf32> to vector<2x512xf32>
    %113 = arith.truncf %111 : vector<2x128xf32> to vector<2x128xbf16>
    %c0_23 = arith.constant 0 : index
    %c0_24 = arith.constant 0 : index
    %114 = vector.load %arg3[%c0_23, %c0_24] : memref<128x512xbf16, #tpu.memory_space<vmem>>, vector<128x512xbf16>
    %cst_25 = arith.constant dense<0.000000e+00> : vector<2x512xf32>
    %115 = tpu.matmul %113, %114, %cst_25 {dimension_numbers = #tpu.dot_dimension_numbers<[1], [0], [0], [1], [0, 0, 1, 1], [], []>} : vector<2x128xbf16>, vector<128x512xbf16>, vector<2x512xf32> -> vector<2x512xf32>
    %116 = arith.addf %112, %115 : vector<2x512xf32>
    %117 = vector.extract_strided_slice %116 {offsets = [0, 0], sizes = [2, 384], strides = [1, 1]} : vector<2x512xf32> to vector<2x384xf32>
    %118 = arith.negf %117 : vector<2x384xf32>
    %119 = math.exp %118 : vector<2x384xf32>
    %cst_26 = arith.constant 1.000000e+00 : f32
    %120 = vector.broadcast %cst_26 : f32 to vector<2x384xf32>
    %121 = arith.addf %120, %119 : vector<2x384xf32>
    %122 = arith.divf %120, %121 : vector<2x384xf32>
    %123 = vector.extract_strided_slice %116 {offsets = [0, 384], sizes = [2, 128], strides = [1, 1]} : vector<2x512xf32> to vector<2x128xf32>
    %124 = math.tanh %123 : vector<2x128xf32>
    %125 = vector.extract_strided_slice %122 {offsets = [0, 0], sizes = [2, 128], strides = [1, 1]} : vector<2x384xf32> to vector<2x128xf32>
    %126 = vector.extract_strided_slice %122 {offsets = [0, 128], sizes = [2, 128], strides = [1, 1]} : vector<2x384xf32> to vector<2x128xf32>
    %127 = vector.extract_strided_slice %122 {offsets = [0, 256], sizes = [2, 128], strides = [1, 1]} : vector<2x384xf32> to vector<2x128xf32>
    %128 = arith.mulf %126, %109 : vector<2x128xf32>
    %129 = arith.mulf %125, %124 : vector<2x128xf32>
    %130 = arith.addf %128, %129 : vector<2x128xf32>
    %131 = math.tanh %130 : vector<2x128xf32>
    %132 = arith.mulf %127, %131 : vector<2x128xf32>
    %133 = vector.extract_strided_slice %9 {offsets = [12, 0], sizes = [2, 512], strides = [1, 1]} : vector<16x512xf32> to vector<2x512xf32>
    %134 = arith.truncf %132 : vector<2x128xf32> to vector<2x128xbf16>
    %c0_27 = arith.constant 0 : index
    %c0_28 = arith.constant 0 : index
    %135 = vector.load %arg3[%c0_27, %c0_28] : memref<128x512xbf16, #tpu.memory_space<vmem>>, vector<128x512xbf16>
    %cst_29 = arith.constant dense<0.000000e+00> : vector<2x512xf32>
    %136 = tpu.matmul %134, %135, %cst_29 {dimension_numbers = #tpu.dot_dimension_numbers<[1], [0], [0], [1], [0, 0, 1, 1], [], []>} : vector<2x128xbf16>, vector<128x512xbf16>, vector<2x512xf32> -> vector<2x512xf32>
    %137 = arith.addf %133, %136 : vector<2x512xf32>
    %138 = vector.extract_strided_slice %137 {offsets = [0, 0], sizes = [2, 384], strides = [1, 1]} : vector<2x512xf32> to vector<2x384xf32>
    %139 = arith.negf %138 : vector<2x384xf32>
    %140 = math.exp %139 : vector<2x384xf32>
    %cst_30 = arith.constant 1.000000e+00 : f32
    %141 = vector.broadcast %cst_30 : f32 to vector<2x384xf32>
    %142 = arith.addf %141, %140 : vector<2x384xf32>
    %143 = arith.divf %141, %142 : vector<2x384xf32>
    %144 = vector.extract_strided_slice %137 {offsets = [0, 384], sizes = [2, 128], strides = [1, 1]} : vector<2x512xf32> to vector<2x128xf32>
    %145 = math.tanh %144 : vector<2x128xf32>
    %146 = vector.extract_strided_slice %143 {offsets = [0, 0], sizes = [2, 128], strides = [1, 1]} : vector<2x384xf32> to vector<2x128xf32>
    %147 = vector.extract_strided_slice %143 {offsets = [0, 128], sizes = [2, 128], strides = [1, 1]} : vector<2x384xf32> to vector<2x128xf32>
    %148 = vector.extract_strided_slice %143 {offsets = [0, 256], sizes = [2, 128], strides = [1, 1]} : vector<2x384xf32> to vector<2x128xf32>
    %149 = arith.mulf %147, %130 : vector<2x128xf32>
    %150 = arith.mulf %146, %145 : vector<2x128xf32>
    %151 = arith.addf %149, %150 : vector<2x128xf32>
    %152 = math.tanh %151 : vector<2x128xf32>
    %153 = arith.mulf %148, %152 : vector<2x128xf32>
    %154 = vector.extract_strided_slice %9 {offsets = [14, 0], sizes = [2, 512], strides = [1, 1]} : vector<16x512xf32> to vector<2x512xf32>
    %155 = arith.truncf %153 : vector<2x128xf32> to vector<2x128xbf16>
    %c0_31 = arith.constant 0 : index
    %c0_32 = arith.constant 0 : index
    %156 = vector.load %arg3[%c0_31, %c0_32] : memref<128x512xbf16, #tpu.memory_space<vmem>>, vector<128x512xbf16>
    %cst_33 = arith.constant dense<0.000000e+00> : vector<2x512xf32>
    %157 = tpu.matmul %155, %156, %cst_33 {dimension_numbers = #tpu.dot_dimension_numbers<[1], [0], [0], [1], [0, 0, 1, 1], [], []>} : vector<2x128xbf16>, vector<128x512xbf16>, vector<2x512xf32> -> vector<2x512xf32>
    %158 = arith.addf %154, %157 : vector<2x512xf32>
    %159 = vector.extract_strided_slice %158 {offsets = [0, 0], sizes = [2, 384], strides = [1, 1]} : vector<2x512xf32> to vector<2x384xf32>
    %160 = arith.negf %159 : vector<2x384xf32>
    %161 = math.exp %160 : vector<2x384xf32>
    %cst_34 = arith.constant 1.000000e+00 : f32
    %162 = vector.broadcast %cst_34 : f32 to vector<2x384xf32>
    %163 = arith.addf %162, %161 : vector<2x384xf32>
    %164 = arith.divf %162, %163 : vector<2x384xf32>
    %165 = vector.extract_strided_slice %158 {offsets = [0, 384], sizes = [2, 128], strides = [1, 1]} : vector<2x512xf32> to vector<2x128xf32>
    %166 = math.tanh %165 : vector<2x128xf32>
    %167 = vector.extract_strided_slice %164 {offsets = [0, 0], sizes = [2, 128], strides = [1, 1]} : vector<2x384xf32> to vector<2x128xf32>
    %168 = vector.extract_strided_slice %164 {offsets = [0, 128], sizes = [2, 128], strides = [1, 1]} : vector<2x384xf32> to vector<2x128xf32>
    %169 = vector.extract_strided_slice %164 {offsets = [0, 256], sizes = [2, 128], strides = [1, 1]} : vector<2x384xf32> to vector<2x128xf32>
    %170 = arith.mulf %168, %151 : vector<2x128xf32>
    %171 = arith.mulf %167, %166 : vector<2x128xf32>
    %172 = arith.addf %170, %171 : vector<2x128xf32>
    %173 = math.tanh %172 : vector<2x128xf32>
    %174 = arith.mulf %169, %173 : vector<2x128xf32>
    %c0_35 = arith.constant 0 : index
    %c0_36 = arith.constant 0 : index
    %175 = vector.load %arg1[%c0_35, %c0_36] : memref<2x128xf32, #tpu.memory_space<vmem>>, vector<2x128xf32>
    %176 = arith.addf %174, %175 : vector<2x128xf32>
    %c0_i32_37 = arith.constant 0 : i32
    %177 = tpu.memref_slice %arg12[%c0_i32_37] : memref<2x!tpu.dma_semaphore, #tpu.memory_space<semaphore_mem>> -> memref<1x!tpu.dma_semaphore, #tpu.memory_space<semaphore_mem>>
    %178 = tpu.memref_squeeze %177 : memref<1x!tpu.dma_semaphore, #tpu.memory_space<semaphore_mem>> -> memref<!tpu.dma_semaphore, #tpu.memory_space<semaphore_mem>>
    tpu.wait_dma2 semaphore(%178 : memref<!tpu.dma_semaphore, #tpu.memory_space<semaphore_mem>>) src(%arg5 : memref<128x1024xbf16, #tpu.memory_space<any>>) dst(%arg10 : memref<128x1024xbf16, #tpu.memory_space<vmem>>)
    %c1_i32_38 = arith.constant 1 : i32
    %179 = tpu.memref_slice %arg12[%c1_i32_38] : memref<2x!tpu.dma_semaphore, #tpu.memory_space<semaphore_mem>> -> memref<1x!tpu.dma_semaphore, #tpu.memory_space<semaphore_mem>>
    %180 = tpu.memref_squeeze %179 : memref<1x!tpu.dma_semaphore, #tpu.memory_space<semaphore_mem>> -> memref<!tpu.dma_semaphore, #tpu.memory_space<semaphore_mem>>
    tpu.wait_dma2 semaphore(%180 : memref<!tpu.dma_semaphore, #tpu.memory_space<semaphore_mem>>) src(%arg7 : memref<1024x128xbf16, #tpu.memory_space<any>>) dst(%arg11 : memref<1024x128xbf16, #tpu.memory_space<vmem>>)
    %181 = arith.truncf %176 : vector<2x128xf32> to vector<2x128xbf16>
    %c0_39 = arith.constant 0 : index
    %c0_40 = arith.constant 0 : index
    %182 = vector.load %arg10[%c0_39, %c0_40] : memref<128x1024xbf16, #tpu.memory_space<vmem>>, vector<128x1024xbf16>
    %cst_41 = arith.constant dense<0.000000e+00> : vector<2x1024xf32>
    %183 = tpu.matmul %181, %182, %cst_41 {dimension_numbers = #tpu.dot_dimension_numbers<[1], [0], [0], [1], [0, 0, 1, 1], [], []>} : vector<2x128xbf16>, vector<128x1024xbf16>, vector<2x1024xf32> -> vector<2x1024xf32>
    %c0_42 = arith.constant 0 : index
    %c0_43 = arith.constant 0 : index
    %184 = vector.load %arg6[%c0_42, %c0_43] : memref<1x1024xf32, #tpu.memory_space<vmem>>, vector<1x1024xf32>
    %185 = vector.broadcast %184 : vector<1x1024xf32> to vector<2x1024xf32>
    %186 = arith.addf %183, %185 : vector<2x1024xf32>
    %cst_44 = arith.constant 0.000000e+00 : f32
    %187 = vector.broadcast %cst_44 : f32 to vector<2x1024xf32>
    %188 = arith.maximumf %186, %187 : vector<2x1024xf32>
    %189 = arith.truncf %188 : vector<2x1024xf32> to vector<2x1024xbf16>
    %c0_45 = arith.constant 0 : index
    %c0_46 = arith.constant 0 : index
    %190 = vector.load %arg11[%c0_45, %c0_46] : memref<1024x128xbf16, #tpu.memory_space<vmem>>, vector<1024x128xbf16>
    %cst_47 = arith.constant dense<0.000000e+00> : vector<2x128xf32>
    %191 = tpu.matmul %189, %190, %cst_47 {dimension_numbers = #tpu.dot_dimension_numbers<[1], [0], [0], [1], [0, 0, 1, 1], [], []>} : vector<2x1024xbf16>, vector<1024x128xbf16>, vector<2x128xf32> -> vector<2x128xf32>
    %c0_48 = arith.constant 0 : index
    %c0_49 = arith.constant 0 : index
    %192 = vector.load %arg8[%c0_48, %c0_49] : memref<1x128xf32, #tpu.memory_space<vmem>>, vector<1x128xf32>
    %193 = vector.broadcast %192 : vector<1x128xf32> to vector<2x128xf32>
    %194 = arith.addf %191, %193 : vector<2x128xf32>
    %c0_50 = arith.constant 0 : index
    %c0_51 = arith.constant 0 : index
    %195 = vector.load %arg9[%c0_50, %c0_51] : memref<2x128xf32, #tpu.memory_space<vmem>>, vector<2x128xf32>
    tpu.vector_store %arg9[%c0_50, %c0_51], %194 {strides = array<i32>} : memref<2x128xf32, #tpu.memory_space<vmem>>, vector<2x128xf32>,
    return
  }
}

</mosaic_0001>

<bundles_post_ra>
// kernel: _forward_padded.1
= control target key start
LH: loop header
LB: loop body
LE: loop exit
PB: predicated region body
PF: predicated region fallthrough
CT: control target
= control target key end

     0   :  { %14 = vsyncpa [#allocation6], 0  ;;  %s4203_s0 = inlined_call_operand.vmem [shape: f32[16,4], index: 0, kind: input, shape index: {}]   ;;  %s4204_s1 = inlined_call_operand.vmem [shape: f32[2,128], index: 1, kind: input, shape index: {}]   ;;  %s4205_s2 = inlined_call_operand.vmem [shape: f32[4,512], index: 2, kind: input, shape index: {}]   ;;  %s4206_s3 = inlined_call_operand.hbm [shape: bf16[128,512], index: 3, kind: input, shape index: {}]   ;;  %s4207_s4 = inlined_call_operand.vmem [shape: f32[1,512], index: 4, kind: input, shape index: {}]   ;;  %s4208_s5 = inlined_call_operand.hbm [shape: bf16[128,1024], index: 5, kind: input, shape index: {}]   ;;  %s4209_s6 = inlined_call_operand.vmem [shape: f32[1,1024], index: 6, kind: input, shape index: {}]   ;;  %s4210_s7 = inlined_call_operand.hbm [shape: bf16[1024,128], index: 7, kind: input, shape index: {}]   ;;  %s4211_s8 = inlined_call_operand.vmem [shape: f32[1,128], index: 8, kind: input, shape index: {}]   ;;  %s4212_s9 = inlined_call_operand.hbm [shape: f32[2,128], index: 9, kind: output, shape index: {}]  }
   0x1   :  { %15 = vsyncpa [#allocation7], 0  ;;  %s26_s11 = sshll.u32 %s4206_s3, 4  ;;  %s3673_s12 = smov [#allocation5]   ;;  %s27_s11 = int_to_ptr.hbm [resolvable:$true] %s26_s11 }
   0x2   :  { %s28_s13 = sshll.u32 %s3673_s12, 4  ;;  %s3674_s14 = smov 256   ;;  %s29_s13 = int_to_ptr.vmem [resolvable:$true] %s28_s13 }
   0x3   :  { %s3675_s15 = smov 16  }
   0x4   :  { %34 = dma.hbm_to_vmem [thread:$0]  %s27_s11, 4096, %s29_s13, [#allocation6], %s3674_s14, %s3674_s14, %s3675_s15  }
   0x5   :  { %3665 = dma.done.wait [#allocation6], 4096  }
   0x6   :  { %3666 = vsyncadd [#allocation6], 4294963200  ;;  %v74_v0 = vld [vmem:[%s4205_s2] sm:$0xff]  ;;  %v75_v1 = vld [vmem:[%s4205_s2 + $0x8] sm:$0xff]  ;;  %vm102_vm0 = vcmask 1043456   ;;  %vm95_vm1 = vcmask 31744  }
   0x7   :  { %88 = vst [vmem:[#allocation1] ss:$2 sm:$0xff] %v74_v0  ;;  %v72_v2 = vld [vmem:[%s4203_s0] sm:$0xff]  ;;  %v2725_v7 = vld [vmem:[#allocation5 + $0xe0] sm:$0xf]  ;;  %s52_s24 = sshll.u32 %s4208_s5, 4  ;;  %s53_s24 = int_to_ptr.hbm [resolvable:$true] %s52_s24 }
   0x8   :  { %90 = vst [vmem:[#allocation1 + $0x10] ss:$2 sm:$0xff] %v75_v1  ;;  %v3304_v8 = vld [vmem:[#allocation5 + $0xec] sm:$0xf0]  ;;  %v3302_v9 = vld [vmem:[#allocation5 + $0xe4] sm:$0xf] }
   0x9   :  { %v3745_v10 = vor.u32 %v3304_v8, %v2725_v7  ;;  %v2727_v11 = vld [vmem:[#allocation5 + $0xf0] sm:$0xf0]  ;;  %v2733_v12 = vld [vmem:[#allocation5 + $0xe8] sm:$0xf]  ;;  %v3305_v13 = vld [vmem:[#allocation5 + $0xf4] sm:$0xf0] }
   0xa   :  { %v3747_v14 = vor.u32 %v3302_v9, %v2727_v11  ;;  %v3749_v15 = vor.u32 %v3305_v13, %v2733_v12  ;;  %v3303_v16 = vld [vmem:[#allocation5 + $0xec] sm:$0xf]  ;;  %v2735_v17 = vld [vmem:[#allocation5 + $0xf8] sm:$0xf0]  ;;  %v2709_v19 = vld [vmem:[#allocation5 + $0xc0] sm:$0xf] }
   0xb   :  { %v3752_v18 = vor.u32 %v3303_v16, %v2735_v17  ;;  %v3300_v20 = vld [vmem:[#allocation5 + $0xcc] sm:$0xf0]  ;;  %v3298_v21 = vld [vmem:[#allocation5 + $0xc4] sm:$0xf]  ;;  %v2711_v23 = vld [vmem:[#allocation5 + $0xd0] sm:$0xf0] }
   0xc   :  { %v3757_v22 = vor.u32 %v3300_v20, %v2709_v19  ;;  %v2717_v24 = vld [vmem:[#allocation5 + $0xc8] sm:$0xf]  ;;  %v3301_v25 = vld [vmem:[#allocation5 + $0xd4] sm:$0xf0]  ;;  %v3759_v26 = vor.u32 %v3298_v21, %v2711_v23  ;;  %v3299_v28 = vld [vmem:[#allocation5 + $0xcc] sm:$0xf] }
   0xd   :  { %v3761_v27 = vor.u32 %v3301_v25, %v2717_v24  ;;  %v2719_v29 = vld [vmem:[#allocation5 + $0xd8] sm:$0xf0]  ;;  %v2693_v31 = vld [vmem:[#allocation5 + $0xa0] sm:$0xf]  ;;  %v3296_v32 = vld [vmem:[#allocation5 + $0xac] sm:$0xf0] }
   0xe   :  { %v91_v3 = vld.sshfl [vmem:[#allocation1] sm:$0xff pattern:$0x75316420]  ;;  %v92_v4 = vld.sshfl [vmem:[#allocation1 + $0x8] sm:$0xff pattern:$0x75316420]  ;;  %v3764_v30 = vor.u32 %v3299_v28, %v2719_v29  ;;  %v3769_v33 = vor.u32 %v3296_v32, %v2693_v31 }
   0xf   :  { %2596 = vmatpush.msk.msra.mxu0 %vm102_vm0, %v91_v3  ;;  %2599 = vmatpush.msk.msra.mxu1 %vm102_vm0, %v92_v4  ;;  %v93_v5 = vld.sshfl [vmem:[#allocation1 + $0x10] sm:$0xff pattern:$0x75316420]  ;;  %v94_v6 = vld.sshfl [vmem:[#allocation1 + $0x18] sm:$0xff pattern:$0x75316420] }
  0x10   :  { %2602 = vmatpush.msk.msra.mxu2 %vm102_vm0, %v93_v5  ;;  %2597 = vmatmul.msk.f32.vlgmr.msra.gmra.mxu0 %vm95_vm1, %v72_v2  ;;  %v3294_v34 = vld [vmem:[#allocation5 + $0xa4] sm:$0xf]  ;;  %v2695_v35 = vld [vmem:[#allocation5 + $0xb0] sm:$0xf0]  ;;  %v2701_v36 = vld [vmem:[#allocation5 + $0xa8] sm:$0xf] }
  0x11   :  { %2600 = vmatmul.msk.f32.vlgmr.msra.gmra.mxu1 %vm95_vm1, %v72_v2  ;;  %2603 = vmatmul.msk.f32.vlgmr.msra.gmra.mxu2 %vm95_vm1, %v72_v2  ;;  %v3771_v37 = vor.u32 %v3294_v34, %v2695_v35  ;;  %v3297_v38 = vld [vmem:[#allocation5 + $0xb4] sm:$0xf0]  ;;  %v3295_v39 = vld [vmem:[#allocation5 + $0xac] sm:$0xf]  ;;  %v2703_v40 = vld [vmem:[#allocation5 + $0xb8] sm:$0xf0] }
  0x12   :  { %2605 = vmatpush.msk.msra.mxu3 %vm102_vm0, %v94_v6  ;;  %459 = vmatpush.bf16.msrb.mxu0 %v3745_v10  ;;  %v3776_v41 = vld [vmem:[%s4207_s4] sm:$0xf]  ;;  %v3779_v42 = vor.u32 %v3297_v38, %v2701_v36  ;;  %v3781_v43 = vor.u32 %v3295_v39, %v2703_v40  ;;  %v2677_v44 = vld [vmem:[#allocation5 + $0x80] sm:$0xf]  ;;  %v3292_v45 = vld [vmem:[#allocation5 + $0x8c] sm:$0xf0] }
  0x13   :  { %2606 = vmatmul.msk.f32.vlgmr.msra.gmra.mxu3 %vm95_vm1, %v72_v2  ;;  %472 = vmatpush.bf16.msrb.mxu1 %v3747_v14  ;;  %v3290_v46 = vld [vmem:[#allocation5 + $0x84] sm:$0xf]  ;;  %v3786_v47 = vor.u32 %v3292_v45, %v2677_v44  ;;  %v2679_v48 = vld [vmem:[#allocation5 + $0x90] sm:$0xf0]  ;;  %v2685_v49 = vld [vmem:[#allocation5 + $0x88] sm:$0xf] }
  0x14   :  { %485 = vmatpush.bf16.msrb.mxu2 %v3749_v15  ;;  %498 = vmatpush.bf16.msrb.mxu3 %v3752_v18  ;;  %v3293_v50 = vld [vmem:[#allocation5 + $0x94] sm:$0xf0]  ;;  %v3788_v51 = vor.u32 %v3290_v46, %v2679_v48  ;;  %v3291_v53 = vld [vmem:[#allocation5 + $0x8c] sm:$0xf]  ;;  %v2687_v54 = vld [vmem:[#allocation5 + $0x98] sm:$0xf0] }
  0x15   :  { %v3790_v52 = vor.u32 %v3293_v50, %v2685_v49  ;;  %v4216_v55 = vperm.slane %v3776_v41, 0  ;;  %v4215_v56 = vperm.slane %v3776_v41, 1  ;;  %v3795_v57 = vor.u32 %v3291_v53, %v2687_v54  ;;  %v2661_v58 = vld [vmem:[#allocation5 + $0x60] sm:$0xf]  ;;  %v3288_v59 = vld [vmem:[#allocation5 + $0x6c] sm:$0xf0] }
  0x16   :  { %460 = vmatpush.bf16.msrb.mxu0 %v3757_v22  ;;  %v3286_v60 = vld [vmem:[#allocation5 + $0x64] sm:$0xf]  ;;  %v3800_v61 = vor.u32 %v3288_v59, %v2661_v58  ;;  %v2663_v62 = vld [vmem:[#allocation5 + $0x70] sm:$0xf0]  ;;  %v2669_v63 = vld [vmem:[#allocation5 + $0x68] sm:$0xf] }
  0x17   :  { %473 = vmatpush.bf16.msrb.mxu1 %v3759_v26  ;;  %v3289_v0 = vld [vmem:[#allocation5 + $0x74] sm:$0xf0]  ;;  %v3802_v1 = vor.u32 %v3286_v60, %v2663_v62  ;;  %v3287_v3 = vld [vmem:[#allocation5 + $0x6c] sm:$0xf]  ;;  %v2671_v4 = vld [vmem:[#allocation5 + $0x78] sm:$0xf0] }
  0x18   :  { %486 = vmatpush.bf16.msrb.mxu2 %v3761_v27  ;;  %499 = vmatpush.bf16.msrb.mxu3 %v3764_v30  ;;  %v3804_v2 = vor.u32 %v3289_v0, %v2669_v63  ;;  %v2645_v5 = vld [vmem:[#allocation5 + $0x40] sm:$0xf]  ;;  %v3807_v7 = vor.u32 %v3287_v3, %v2671_v4  ;;  %v3284_v8 = vld [vmem:[#allocation5 + $0x4c] sm:$0xf0]  ;;  %v3282_v9 = vld [vmem:[#allocation5 + $0x44] sm:$0xf] }
  0x19   :  { %v2647_v11 = vld [vmem:[#allocation5 + $0x50] sm:$0xf0]  ;;  %v3814_v16 = vor.u32 %v3284_v8, %v2645_v5  ;;  %v2653_v19 = vld [vmem:[#allocation5 + $0x48] sm:$0xf]  ;;  %v3285_v20 = vld [vmem:[#allocation5 + $0x54] sm:$0xf0] }
  0x1a   :  { %461 = vmatpush.bf16.msrb.mxu0 %v3769_v33  ;;  %v3816_v17 = vor.u32 %v3282_v9, %v2647_v11  ;;  %v3283_v21 = vld [vmem:[#allocation5 + $0x4c] sm:$0xf]  ;;  %v4214_v24 = vperm.slane %v3776_v41, 2  ;;  %v3825_v25 = vor.u32 %v3285_v20, %v2653_v19  ;;  %v2655_v28 = vld [vmem:[#allocation5 + $0x58] sm:$0xf0]  ;;  %v73_v29 = vld [vmem:[%s4203_s0 + $0x8] sm:$0xff] }
  0x1b   :  { %474 = vmatpush.bf16.msrb.mxu1 %v3771_v37  ;;  %v2629_v31 = vld [vmem:[#allocation5 + $0x20] sm:$0xf]  ;;  %v3831_v34 = vor.u32 %v3283_v21, %v2655_v28  ;;  %2598 = vmatmul.msk.f32.gmra.mxu0 %vm95_vm1, %v73_v29  ;;  %v3280_v35 = vld [vmem:[#allocation5 + $0x2c] sm:$0xf0]  ;;  %v3278_v36 = vld [vmem:[#allocation5 + $0x24] sm:$0xf] }
  0x1c   :  { %487 = vmatpush.bf16.msrb.mxu2 %v3779_v42  ;;  %500 = vmatpush.bf16.msrb.mxu3 %v3781_v43  ;;  %v3838_v39 = vor.u32 %v3280_v35, %v2629_v31  ;;  %v2631_v40 = vld [vmem:[#allocation5 + $0x30] sm:$0xf0]  ;;  %v2637_v44 = vld [vmem:[#allocation5 + $0x28] sm:$0xf]  ;;  %v3281_v46 = vld [vmem:[#allocation5 + $0x34] sm:$0xf0] }
  0x1d   :  { %2601 = vmatmul.msk.f32.gmra.mxu1 %vm95_vm1, %v73_v29  ;;  %2604 = vmatmul.msk.f32.gmra.mxu2 %vm95_vm1, %v73_v29  ;;  %v3842_v45 = vor.u32 %v3278_v36, %v2631_v40  ;;  %v3279_v48 = vld [vmem:[#allocation5 + $0x2c] sm:$0xf]  ;;  %v2639_v49 = vld [vmem:[#allocation5 + $0x38] sm:$0xf0]  ;;  %v3846_v50 = vor.u32 %v3281_v46, %v2637_v44  ;;  %v2613_v54 = vld [vmem:[#allocation5] sm:$0xf] }
  0x1e   :  { %462 = vmatpush.bf16.msrb.mxu0 %v3786_v47  ;;  %2607 = vmatmul.msk.f32.gmra.mxu3 %vm95_vm1, %v73_v29  ;;  %v3848_v53 = vor.u32 %v3279_v48, %v2639_v49  ;;  %v3276_v58 = vld [vmem:[#allocation5 + $0xc] sm:$0xf0]  ;;  %v3274_v59 = vld [vmem:[#allocation5 + $0x4] sm:$0xf]  ;;  %v2615_v62 = vld [vmem:[#allocation5 + $0x10] sm:$0xf0] }
  0x1f   :  { %475 = vmatpush.bf16.msrb.mxu1 %v3788_v51  ;;  %v2621_v63 = vld [vmem:[#allocation5 + $0x8] sm:$0xf]  ;;  %v3277_v0 = vld [vmem:[#allocation5 + $0x14] sm:$0xf0]  ;;  %v3855_v4 = vor.u32 %v3276_v58, %v2613_v54  ;;  %v3275_v5 = vld [vmem:[#allocation5 + $0xc] sm:$0xf]  ;;  %v3858_v8 = vor.u32 %v3274_v59, %v2615_v62 }
  0x20   :  { %488 = vmatpush.bf16.msrb.mxu2 %v3790_v52  ;;  %501 = vmatpush.bf16.msrb.mxu3 %v3795_v57  ;;  %v3863_v11 = vor.u32 %v3277_v0, %v2621_v63  ;;  %v4213_v29 = vperm.slane %v3776_v41, 3  ;;  %s3676_s25 = smov [#allocation2]   ;;  %s66_s29 = sshll.u32 %s4210_s7, 4  ;;  %s67_s29 = int_to_ptr.hbm [resolvable:$true] %s66_s29 }
  0x21   :  { %s54_s26 = sshll.u32 %s3676_s25, 4  ;;  %s3677_s30 = smov [#allocation3]   ;;  %s55_s26 = int_to_ptr.vmem [resolvable:$true] %s54_s26 }
  0x22   :  { %463 = vmatpush.bf16.msrb.mxu0 %v3800_v61  ;;  %57 = dma.hbm_to_vmem [thread:$0]  %s53_s24, 8192, %s55_s26, [#allocation4] }
  0x23   :  { %476 = vmatpush.bf16.msrb.mxu1 %v3802_v1  ;;  %s68_s10 = sshll.u32 %s3677_s30, 4  ;;  %s69_s10 = int_to_ptr.vmem [resolvable:$true] %s68_s10 }
  0x24   :  { %489 = vmatpush.bf16.msrb.mxu2 %v3804_v2  ;;  %502 = vmatpush.bf16.msrb.mxu3 %v3807_v7  ;;  %71 = dma.hbm_to_vmem [thread:$0]  %s67_s29, 8192, %s69_s10, [#allocation4 + $0x1] }
  0x26   :  { %464 = vmatpush.bf16.msrb.mxu0 %v3814_v16 }
  0x27   :  { %477 = vmatpush.bf16.msrb.mxu1 %v3816_v17 }
  0x28   :  { %490 = vmatpush.bf16.msrb.mxu2 %v3825_v25  ;;  %503 = vmatpush.bf16.msrb.mxu3 %v3831_v34 }
  0x2a   :  { %465 = vmatpush.bf16.msrb.mxu0 %v3838_v39 }
  0x2b   :  { %478 = vmatpush.bf16.msrb.mxu1 %v3842_v45 }
  0x2c   :  { %491 = vmatpush.bf16.msrb.mxu2 %v3846_v50  ;;  %504 = vmatpush.bf16.msrb.mxu3 %v3848_v53 }
  0x2e   :  { %466 = vmatpush.bf16.msrb.mxu0 %v3855_v4 }
  0x2f   :  { %479 = vmatpush.bf16.msrb.mxu1 %v3858_v8 }
  0x30   :  { %492 = vmatpush.bf16.msrb.mxu2 %v3863_v11 }
  0x32   :  { %597 = vmatpush.bf16.msra.mxu0 %v3745_v10 }
  0x33   :  { %610 = vmatpush.bf16.msra.mxu1 %v3747_v14 }
  0x34   :  { %623 = vmatpush.bf16.msra.mxu2 %v3749_v15 }
  0x36   :  { %598 = vmatpush.bf16.msra.mxu0 %v3757_v22 }
  0x37   :  { %611 = vmatpush.bf16.msra.mxu1 %v3759_v26 }
  0x38   :  { %624 = vmatpush.bf16.msra.mxu2 %v3761_v27 }
  0x3a   :  { %599 = vmatpush.bf16.msra.mxu0 %v3769_v33 }
  0x3b   :  { %612 = vmatpush.bf16.msra.mxu1 %v3771_v37 }
  0x3c   :  { %625 = vmatpush.bf16.msra.mxu2 %v3779_v42 }
  0x3e   :  { %600 = vmatpush.bf16.msra.mxu0 %v3786_v47 }
  0x3f   :  { %613 = vmatpush.bf16.msra.mxu1 %v3788_v51 }
  0x40   :  { %626 = vmatpush.bf16.msra.mxu2 %v3790_v52 }
  0x42   :  { %601 = vmatpush.bf16.msra.mxu0 %v3800_v61 }
  0x43   :  { %614 = vmatpush.bf16.msra.mxu1 %v3802_v1 }
  0x44   :  { %627 = vmatpush.bf16.msra.mxu2 %v3804_v2 }
  0x46   :  { %602 = vmatpush.bf16.msra.mxu0 %v3814_v16 }
  0x47   :  { %615 = vmatpush.bf16.msra.mxu1 %v3816_v17 }
  0x48   :  { %628 = vmatpush.bf16.msra.mxu2 %v3825_v25 }
  0x4a   :  { %603 = vmatpush.bf16.msra.mxu0 %v3838_v39 }
  0x4b   :  { %616 = vmatpush.bf16.msra.mxu1 %v3842_v45 }
  0x4c   :  { %629 = vmatpush.bf16.msra.mxu2 %v3846_v50 }
  0x4e   :  { %604 = vmatpush.bf16.msra.mxu0 %v3855_v4 }
  0x4f   :  { %617 = vmatpush.bf16.msra.mxu1 %v3858_v8 }
  0x50   :  { %630 = vmatpush.bf16.msra.mxu2 %v3863_v11 }
  0x8d   :  { %v128_v6 = vpop.f32.mrf.mxu0 }
  0x8e   :  { %v3811_v12 = vadd.f32 %v128_v6, %v4216_v55  ;;  %v151_v13 = vpop.f32.mrf.mxu1  ;;  %v2623_v6 = vld [vmem:[#allocation5 + $0x18] sm:$0xf0] }
  0x8f   :  { %v3820_v23 = vadd.f32 %v151_v13, %v4215_v56  ;;  %v3865_v13 = vor.u32 %v3275_v5, %v2623_v6 }
  0x90   :  { %v2608_v32 = vmul.f32 -1.442695, %v3811_v12 }
  0x91   :  { %v2609_v38 = vmul.f32 -1.442695, %v3820_v23  ;;  %505 = vmatpush.bf16.msrb.mxu3 %v3865_v13 }
  0x92   :  { %3440 = vpow2.f32 %v2608_v32 }
  0x93   :  { %3442 = vpow2.f32 %v2609_v38 }
  0x94   :  { %v174_v60 = vpop.f32.mrf.mxu2 }
  0x95   :  { %v3852_v3 = vadd.f32 %v174_v60, %v4214_v24  ;;  %636 = vmatpush.bf16.msra.mxu3 %v3752_v18 }
  0x96   :  { %v197_v31 = vpop.f32.mrf.mxu3 }
  0x97   :  { %v2610_v9 = vmul.f32 -1.442695, %v3852_v3  ;;  %v3879_v35 = vadd.f32 %v197_v31, %v4213_v29 }
  0x98   :  { %v3441_v19 = vpop.eup %3440 }
  0x99   :  { %v3443_v20 = vpop.eup %3442  ;;  %v212_v21 = vadd.f32 1.0, %v3441_v19  ;;  %3444 = vpow2.f32 %v2610_v9  ;;  %637 = vmatpush.bf16.msra.mxu3 %v3764_v30 }
  0x9a   :  { %v213_v28 = vadd.f32 1.0, %v3443_v20 }
  0x9b   :  { %3446 = vrcp.f32 %v212_v21  ;;  %v226_v54 = vand.u32 2147483648, %v212_v21  ;;  %v224_v60 = vand.u32 2147483647, %v212_v21  ;;  %vm220_vm4 = vweird.f32 %v212_v21 }
  0x9c   :  { %3448 = vrcp.f32 %v213_v28  ;;  %v241_v58 = vand.u32 2147483648, %v213_v28  ;;  %v239_v63 = vand.u32 2147483647, %v213_v28  ;;  %vm235_vm5 = vweird.f32 %v213_v28 }
  0x9d   :  { %638 = vmatpush.bf16.msra.mxu3 %v3781_v43  ;;  %v227_v9 = vor.u32 1.1754944e-38, %v226_v54  ;;  %vm225_vm7 = vcmp.eq.f32.partialorder %v224_v60, 8.507059e+37 }
  0x9e   :  { %vm240_vm9 = vcmp.eq.f32.partialorder %v239_v63, 8.507059e+37 }
  0x9f   :  { %v3445_v32 = vpop.eup %3444 }
  0xa0   :  { %v3881_v36 = vadd.f32 1.0, %v3445_v32  ;;  %v242_v32 = vor.u32 1.1754944e-38, %v241_v58 }
  0xa1   :  { %v3447_v38 = vpop.eup %3446  ;;  %639 = vmatpush.bf16.msra.mxu3 %v3795_v57 }
  0xa2   :  { %v3449_v40 = vpop.eup %3448  ;;  %v216_v44 = vmul.f32 %v3447_v38, %v212_v21  ;;  %3450 = vrcp.f32 %v3881_v36  ;;  %vm221_vm2 = vweird.f32 %v3447_v38  ;;  %vm250_vm11 = vweird.f32 %v3881_v36 }
  0xa3   :  { %v231_v46 = vmul.f32 %v3449_v40, %v213_v28  ;;  %3452 = vtanh.f32 %v3879_v35  ;;  %vm236_vm3 = vweird.f32 %v3449_v40  ;;  %vm222_vm6 = vmor %vm220_vm4, %vm221_vm2 }
  0xa4   :  { %v217_v48 = vsub.f32 1.0, %v216_v44  ;;  %vm237_vm8 = vmor %vm235_vm5, %vm236_vm3 }
  0xa5   :  { %v232_v49 = vsub.f32 1.0, %v231_v46  ;;  %640 = vmatpush.bf16.msra.mxu3 %v3807_v7 }
  0xa6   :  { %v218_v59 = vmul.f32 %v3447_v38, %v217_v48 }
  0xa7   :  { %v233_v62 = vmul.f32 %v3449_v40, %v232_v49 }
  0xa8   :  { %v3451_v0 = vpop.eup %3450  ;;  %v219_v5 = vadd.f32 %v3447_v38, %v218_v59  ;;  %v254_v59 = vand.u32 2147483647, %v3881_v36 }
  0xa9   :  { %v3453_v6 = vpop.eup %3452  ;;  %v234_v19 = vadd.f32 %v3449_v40, %v233_v62  ;;  %v246_v20 = vmul.f32 %v3451_v0, %v3881_v36  ;;  %vm251_vm10 = vweird.f32 %v3451_v0  ;;  %641 = vmatpush.bf16.msra.mxu3 %v3831_v34 }
  0xaa   :  { %v223_v31 = vsel %vm222_vm6, %v3447_v38, %v219_v5  ;;  %vm252_vm12 = vmor %vm250_vm11, %vm251_vm10  ;;  %vm255_vm13 = vcmp.eq.f32.partialorder %v254_v59, 8.507059e+37 }
  0xab   :  { %v228_v21 = vsel %vm225_vm7, %v227_v9, %v223_v31  ;;  %v238_v44 = vsel %vm237_vm8, %v3449_v40, %v234_v19  ;;  %v247_v46 = vsub.f32 1.0, %v246_v20  ;;  %v256_v40 = vand.u32 2147483648, %v3881_v36  ;;  %v3954_v9 = vpop.f32.mrf.mxu1  ;;  %v3956_v19 = vpop.f32.mrf.mxu2 }
  0xac   :  { %v262_v48 = vmul.f32 %v3453_v6, %v228_v21  ;;  %v243_v28 = vsel %vm240_vm9, %v242_v32, %v238_v44  ;;  %4218 = vst [vmem:[#allocation20_spill] sm:$0xff] %v3954_v9  ;;  %v3958_v20 = vpop.f32.mrf.mxu3 }
  0xad   :  { %v248_v49 = vmul.f32 %v3451_v0, %v247_v46  ;;  %v261_v54 = vmul.f32 0.0, %v243_v28  ;;  %v257_v62 = vor.u32 1.1754944e-38, %v256_v40  ;;  %642 = vmatpush.bf16.msra.mxu3 %v3848_v53  ;;  %4219 = vst [vmem:[#allocation21_spill] sm:$0xff] %v3956_v19 }
  0xae   :  { %4220 = vst [vmem:[#allocation22_spill] sm:$0xff] %v3958_v20 }
  0xaf   :  { %v3903_v38 = vadd.f32 %v262_v48, %v261_v54  ;;  %v249_v58 = vadd.f32 %v3451_v0, %v248_v49 }
  0xb1   :  { %3454 = vtanh.f32 %v3903_v38  ;;  %v253_v60 = vsel %vm252_vm12, %v3451_v0, %v249_v58  ;;  %643 = vmatpush.bf16.msra.mxu3 %v3865_v13  ;;  %v3952_v0 = vpop.f32.mrf.mxu0 }
  0xb2   :  { %v258_v5 = vsel %vm255_vm13, %v257_v62, %v253_v60  ;;  %4217 = vst [vmem:[#allocation19_spill] sm:$0xff] %v3952_v0 }
  0xb7   :  { %v3455_v63 = vpop.eup %3454 }
  0xb8   :  { %v265_v6 = vmul.f32 %v3455_v63, %v258_v5 }
  0xba   :  { %v266_v36 = vpack.c.bf16 %v265_v6, %v265_v6 }
  0xbc   :  { %467 = vmatmul.bf16.vlgmr.msrb.gmra.mxu0 %v266_v36  ;;  %480 = vmatmul.bf16.vlgmr.msrb.gmra.mxu1 %v266_v36 }
  0xbd   :  { %493 = vmatmul.bf16.vlgmr.msrb.gmra.mxu2 %v266_v36  ;;  %506 = vmatmul.bf16.vlgmr.msrb.gmra.mxu3 %v266_v36 }
  0xbe   :  { %735 = vmatpush.bf16.msrb.mxu0 %v3745_v10  ;;  %748 = vmatpush.bf16.msrb.mxu1 %v3747_v14 }
  0xbf   :  { %761 = vmatpush.bf16.msrb.mxu2 %v3749_v15  ;;  %774 = vmatpush.bf16.msrb.mxu3 %v3752_v18 }
  0xc2   :  { %736 = vmatpush.bf16.msrb.mxu0 %v3757_v22  ;;  %749 = vmatpush.bf16.msrb.mxu1 %v3759_v26 }
  0xc3   :  { %762 = vmatpush.bf16.msrb.mxu2 %v3761_v27  ;;  %775 = vmatpush.bf16.msrb.mxu3 %v3764_v30 }
  0xc6   :  { %737 = vmatpush.bf16.msrb.mxu0 %v3769_v33  ;;  %750 = vmatpush.bf16.msrb.mxu1 %v3771_v37 }
  0xc7   :  { %763 = vmatpush.bf16.msrb.mxu2 %v3779_v42  ;;  %776 = vmatpush.bf16.msrb.mxu3 %v3781_v43 }
  0xca   :  { %738 = vmatpush.bf16.msrb.mxu0 %v3786_v47  ;;  %751 = vmatpush.bf16.msrb.mxu1 %v3788_v51 }
  0xcb   :  { %764 = vmatpush.bf16.msrb.mxu2 %v3790_v52  ;;  %777 = vmatpush.bf16.msrb.mxu3 %v3795_v57 }
  0xce   :  { %739 = vmatpush.bf16.msrb.mxu0 %v3800_v61  ;;  %752 = vmatpush.bf16.msrb.mxu1 %v3802_v1 }
  0xcf   :  { %765 = vmatpush.bf16.msrb.mxu2 %v3804_v2  ;;  %778 = vmatpush.bf16.msrb.mxu3 %v3807_v7 }
  0xd2   :  { %740 = vmatpush.bf16.msrb.mxu0 %v3814_v16  ;;  %753 = vmatpush.bf16.msrb.mxu1 %v3816_v17 }
  0xd3   :  { %766 = vmatpush.bf16.msrb.mxu2 %v3825_v25  ;;  %779 = vmatpush.bf16.msrb.mxu3 %v3831_v34 }
  0xd6   :  { %741 = vmatpush.bf16.msrb.mxu0 %v3838_v39  ;;  %754 = vmatpush.bf16.msrb.mxu1 %v3842_v45 }
  0xd7   :  { %767 = vmatpush.bf16.msrb.mxu2 %v3846_v50  ;;  %780 = vmatpush.bf16.msrb.mxu3 %v3848_v53 }
  0xda   :  { %742 = vmatpush.bf16.msrb.mxu0 %v3855_v4  ;;  %755 = vmatpush.bf16.msrb.mxu1 %v3858_v8 }
  0xdb   :  { %768 = vmatpush.bf16.msrb.mxu2 %v3863_v11  ;;  %781 = vmatpush.bf16.msrb.mxu3 %v3865_v13 }
 0x139   :  { %v468_v31 = vpop.f32.mrf.mxu0  ;;  %v481_v32 = vpop.f32.mrf.mxu1 }
 0x13a   :  { %v515_v21 = vrot.slane %v468_v31, 6  ;;  %v516_v44 = vrot.slane %v481_v32, 6 }
 0x13c   :  { %v523_v46 = vadd.f32 %v515_v21, %v3811_v12  ;;  %v524_v48 = vadd.f32 %v516_v44, %v3820_v23 }
 0x13e   :  { %v2739_v28 = vmul.f32 -1.442695, %v523_v46  ;;  %v2740_v49 = vmul.f32 -1.442695, %v524_v48 }
 0x140   :  { %3456 = vpow2.f32 %v2739_v28  ;;  %v494_v54 = vpop.f32.mrf.mxu2  ;;  %v507_v58 = vpop.f32.mrf.mxu3 }
 0x141   :  { %3458 = vpow2.f32 %v2740_v49  ;;  %v517_v40 = vrot.slane %v494_v54, 6  ;;  %v470_v59 = vpop.f32.mrf.mxu0  ;;  %v483_v60 = vpop.f32.mrf.mxu1  ;;  %v518_v44 = vrot.slane %v507_v58, 6 }
 0x143   :  { %v525_v62 = vadd.f32 %v517_v40, %v3852_v3  ;;  %v526_v49 = vadd.f32 %v518_v44, %v3879_v35 }
 0x145   :  { %v2741_v63 = vmul.f32 -1.442695, %v525_v62 }
 0x146   :  { %v3457_v5 = vpop.eup %3456 }
 0x147   :  { %v3459_v6 = vpop.eup %3458  ;;  %v536_v36 = vadd.f32 1.0, %v3457_v5  ;;  %3460 = vpow2.f32 %v2741_v63 }
 0x148   :  { %v537_v31 = vadd.f32 1.0, %v3459_v6  ;;  %v496_v32 = vpop.f32.mrf.mxu2  ;;  %v509_v21 = vpop.f32.mrf.mxu3 }
 0x149   :  { %3462 = vrcp.f32 %v536_v36  ;;  %v550_v29 = vand.u32 2147483648, %v536_v36  ;;  %v548_v6 = vand.u32 2147483647, %v536_v36  ;;  %vm544_vm0 = vweird.f32 %v536_v36 }
 0x14a   :  { %3464 = vrcp.f32 %v537_v31  ;;  %v565_v63 = vand.u32 2147483648, %v537_v31  ;;  %v563_v58 = vand.u32 2147483647, %v537_v31  ;;  %vm559_vm1 = vweird.f32 %v537_v31 }
 0x14b   :  { %v551_v24 = vor.u32 1.1754944e-38, %v550_v29  ;;  %vm549_vm4 = vcmp.eq.f32.partialorder %v548_v6, 8.507059e+37 }
 0x14c   :  { %vm564_vm5 = vcmp.eq.f32.partialorder %v563_v58, 8.507059e+37 }
 0x14d   :  { %v3461_v46 = vpop.eup %3460 }
 0x14e   :  { %v538_v48 = vadd.f32 1.0, %v3461_v46 }
 0x14f   :  { %v3463_v28 = vpop.eup %3462 }
 0x150   :  { %v3465_v54 = vpop.eup %3464  ;;  %v540_v59 = vmul.f32 %v3463_v28, %v536_v36  ;;  %3466 = vrcp.f32 %v538_v48  ;;  %vm545_vm14 = vweird.f32 %v3463_v28  ;;  %v580_v29 = vand.u32 2147483648, %v538_v48 }
 0x151   :  { %v555_v40 = vmul.f32 %v3465_v54, %v537_v31  ;;  %3468 = vtanh.f32 %v526_v49  ;;  %vm560_vm15 = vweird.f32 %v3465_v54  ;;  %vm546_vm2 = vmor %vm544_vm0, %vm545_vm14  ;;  %v586_v49 = vrot.slane %v3903_v38, 6 }
 0x152   :  { %v541_v60 = vsub.f32 1.0, %v540_v59  ;;  %vm561_vm3 = vmor %vm559_vm1, %vm560_vm15  ;;  %v566_v59 = vor.u32 1.1754944e-38, %v565_v63  ;;  %vm574_vm7 = vweird.f32 %v538_v48  ;;  %v581_v63 = vor.u32 1.1754944e-38, %v580_v29 }
 0x153   :  { %v556_v62 = vsub.f32 1.0, %v555_v40 }
 0x154   :  { %v542_v5 = vmul.f32 %v3463_v28, %v541_v60 }
 0x155   :  { %v557_v32 = vmul.f32 %v3465_v54, %v556_v62 }
 0x156   :  { %v3467_v21 = vpop.eup %3466  ;;  %v543_v46 = vadd.f32 %v3463_v28, %v542_v5 }
 0x157   :  { %v570_v44 = vmul.f32 %v3467_v21, %v538_v48  ;;  %v558_v56 = vadd.f32 %v3465_v54, %v557_v32  ;;  %v3469_v60 = vpop.eup %3468  ;;  %vm575_vm6 = vweird.f32 %v3467_v21 }
 0x158   :  { %v547_v40 = vsel %vm546_vm2, %v3463_v28, %v543_v46  ;;  %v578_v28 = vand.u32 2147483647, %v538_v48  ;;  %vm576_vm8 = vmor %vm574_vm7, %vm575_vm6 }
 0x159   :  { %v571_v55 = vsub.f32 1.0, %v570_v44  ;;  %v552_v20 = vsel %vm549_vm4, %v551_v24, %v547_v40  ;;  %v562_v62 = vsel %vm561_vm3, %v3465_v54, %v558_v56 }
 0x15a   :  { %v567_v19 = vsel %vm564_vm5, %v566_v59, %v562_v62  ;;  %v589_v9 = vmul.f32 %v3469_v60, %v552_v20  ;;  %vm579_vm9 = vcmp.eq.f32.partialorder %v578_v28, 8.507059e+37 }
 0x15b   :  { %v588_v5 = vmul.f32 %v586_v49, %v567_v19  ;;  %v572_v36 = vmul.f32 %v3467_v21, %v571_v55 }
 0x15d   :  { %v3965_v31 = vadd.f32 %v589_v9, %v588_v5  ;;  %v573_v0 = vadd.f32 %v3467_v21, %v572_v36 }
 0x15f   :  { %3470 = vtanh.f32 %v3965_v31  ;;  %v577_v38 = vsel %vm576_vm8, %v3467_v21, %v573_v0 }
 0x160   :  { %v582_v56 = vsel %vm579_vm9, %v581_v63, %v577_v38 }
 0x165   :  { %v3471_v24 = vpop.eup %3470 }
 0x166   :  { %v592_v54 = vmul.f32 %v3471_v24, %v582_v56 }
 0x168   :  { %v593_v6 = vpack.c.bf16 %v592_v54, %v592_v54 }
 0x16a   :  { %v595_v20 = vrot.slane %v593_v6, 1 }
 0x16c   :  { %605 = vmatmul.bf16.vlgmr.msra.gmra.mxu0 %v595_v20  ;;  %618 = vmatmul.bf16.vlgmr.msra.gmra.mxu1 %v595_v20 }
 0x16d   :  { %631 = vmatmul.bf16.vlgmr.msra.gmra.mxu2 %v595_v20  ;;  %644 = vmatmul.bf16.vlgmr.msra.gmra.mxu3 %v595_v20 }
 0x16e   :  { %873 = vmatpush.bf16.msra.mxu0 %v3745_v10  ;;  %886 = vmatpush.bf16.msra.mxu1 %v3747_v14 }
 0x16f   :  { %899 = vmatpush.bf16.msra.mxu2 %v3749_v15  ;;  %912 = vmatpush.bf16.msra.mxu3 %v3752_v18 }
 0x172   :  { %874 = vmatpush.bf16.msra.mxu0 %v3757_v22  ;;  %887 = vmatpush.bf16.msra.mxu1 %v3759_v26 }
 0x173   :  { %900 = vmatpush.bf16.msra.mxu2 %v3761_v27  ;;  %913 = vmatpush.bf16.msra.mxu3 %v3764_v30 }
 0x176   :  { %875 = vmatpush.bf16.msra.mxu0 %v3769_v33  ;;  %888 = vmatpush.bf16.msra.mxu1 %v3771_v37 }
 0x177   :  { %901 = vmatpush.bf16.msra.mxu2 %v3779_v42  ;;  %914 = vmatpush.bf16.msra.mxu3 %v3781_v43 }
 0x17a   :  { %876 = vmatpush.bf16.msra.mxu0 %v3786_v47  ;;  %889 = vmatpush.bf16.msra.mxu1 %v3788_v51 }
 0x17b   :  { %902 = vmatpush.bf16.msra.mxu2 %v3790_v52  ;;  %915 = vmatpush.bf16.msra.mxu3 %v3795_v57 }
 0x17e   :  { %877 = vmatpush.bf16.msra.mxu0 %v3800_v61  ;;  %890 = vmatpush.bf16.msra.mxu1 %v3802_v1 }
 0x17f   :  { %903 = vmatpush.bf16.msra.mxu2 %v3804_v2  ;;  %916 = vmatpush.bf16.msra.mxu3 %v3807_v7 }
 0x182   :  { %878 = vmatpush.bf16.msra.mxu0 %v3814_v16  ;;  %891 = vmatpush.bf16.msra.mxu1 %v3816_v17 }
 0x183   :  { %904 = vmatpush.bf16.msra.mxu2 %v3825_v25  ;;  %917 = vmatpush.bf16.msra.mxu3 %v3831_v34 }
 0x186   :  { %879 = vmatpush.bf16.msra.mxu0 %v3838_v39  ;;  %892 = vmatpush.bf16.msra.mxu1 %v3842_v45 }
 0x187   :  { %905 = vmatpush.bf16.msra.mxu2 %v3846_v50  ;;  %918 = vmatpush.bf16.msra.mxu3 %v3848_v53 }
 0x18a   :  { %880 = vmatpush.bf16.msra.mxu0 %v3855_v4  ;;  %893 = vmatpush.bf16.msra.mxu1 %v3858_v8 }
 0x18b   :  { %906 = vmatpush.bf16.msra.mxu2 %v3863_v11  ;;  %919 = vmatpush.bf16.msra.mxu3 %v3865_v13 }
 0x1e9   :  { %v606_v55 = vpop.f32.mrf.mxu0  ;;  %v619_v0 = vpop.f32.mrf.mxu1 }
 0x1ea   :  { %v653_v9 = vrot.slane %v606_v55, 4  ;;  %v654_v19 = vrot.slane %v619_v0, 4 }
 0x1ec   :  { %v661_v48 = vadd.f32 %v653_v9, %v3811_v12  ;;  %v662_v32 = vadd.f32 %v654_v19, %v3820_v23 }
 0x1ee   :  { %v2742_v58 = vmul.f32 -1.442695, %v661_v48  ;;  %v2743_v21 = vmul.f32 -1.442695, %v662_v32 }
 0x1f0   :  { %3472 = vpow2.f32 %v2742_v58  ;;  %v632_v46 = vpop.f32.mrf.mxu2  ;;  %v645_v44 = vpop.f32.mrf.mxu3 }
 0x1f1   :  { %3474 = vpow2.f32 %v2743_v21  ;;  %v655_v59 = vrot.slane %v632_v46, 4  ;;  %v608_v40 = vpop.f32.mrf.mxu0  ;;  %v621_v49 = vpop.f32.mrf.mxu1  ;;  %v656_v24 = vrot.slane %v645_v44, 4 }
 0x1f3   :  { %v663_v60 = vadd.f32 %v655_v59, %v3852_v3  ;;  %v664_v20 = vadd.f32 %v656_v24, %v3879_v35 }
 0x1f5   :  { %v2744_v62 = vmul.f32 -1.442695, %v663_v60 }
 0x1f6   :  { %v3473_v5 = vpop.eup %3472 }
 0x1f7   :  { %v3475_v36 = vpop.eup %3474  ;;  %v674_v29 = vadd.f32 1.0, %v3473_v5  ;;  %3476 = vpow2.f32 %v2744_v62 }
 0x1f8   :  { %v675_v28 = vadd.f32 1.0, %v3475_v36  ;;  %v634_v38 = vpop.f32.mrf.mxu2  ;;  %v647_v63 = vpop.f32.mrf.mxu3  ;;  %v724_v36 = vrot.slane %v3965_v31, 6 }
 0x1f9   :  { %3478 = vrcp.f32 %v674_v29  ;;  %v688_v32 = vand.u32 2147483648, %v674_v29  ;;  %v686_v46 = vand.u32 2147483647, %v674_v29  ;;  %vm682_vm12 = vweird.f32 %v674_v29 }
 0x1fa   :  { %3480 = vrcp.f32 %v675_v28  ;;  %v703_v58 = vand.u32 2147483648, %v675_v28  ;;  %v701_v44 = vand.u32 2147483647, %v675_v28  ;;  %vm697_vm13 = vweird.f32 %v675_v28 }
 0x1fb   :  { %v689_v62 = vor.u32 1.1754944e-38, %v688_v32  ;;  %vm687_vm0 = vcmp.eq.f32.partialorder %v686_v46, 8.507059e+37 }
 0x1fc   :  { %v704_v38 = vor.u32 1.1754944e-38, %v703_v58  ;;  %vm702_vm1 = vcmp.eq.f32.partialorder %v701_v44, 8.507059e+37 }
 0x1fd   :  { %v3477_v56 = vpop.eup %3476 }
 0x1fe   :  { %v676_v54 = vadd.f32 1.0, %v3477_v56 }
 0x1ff   :  { %v3479_v6 = vpop.eup %3478 }
 0x200   :  { %v3481_v55 = vpop.eup %3480  ;;  %v678_v0 = vmul.f32 %v3479_v6, %v674_v29  ;;  %3482 = vrcp.f32 %v676_v54  ;;  %vm683_vm10 = vweird.f32 %v3479_v6  ;;  %v718_v31 = vand.u32 2147483648, %v676_v54 }
 0x201   :  { %v693_v9 = vmul.f32 %v3481_v55, %v675_v28  ;;  %3484 = vtanh.f32 %v664_v20  ;;  %vm698_vm11 = vweird.f32 %v3481_v55  ;;  %vm684_vm14 = vmor %vm682_vm12, %vm683_vm10  ;;  %vm712_vm3 = vweird.f32 %v676_v54 }
 0x202   :  { %v679_v19 = vsub.f32 1.0, %v678_v0  ;;  %vm699_vm15 = vmor %vm697_vm13, %vm698_vm11  ;;  %v716_v32 = vand.u32 2147483647, %v676_v54  ;;  %v719_v58 = vor.u32 1.1754944e-38, %v718_v31 }
 0x203   :  { %v694_v48 = vsub.f32 1.0, %v693_v9 }
 0x204   :  { %v680_v21 = vmul.f32 %v3479_v6, %v679_v19  ;;  %vm717_vm5 = vcmp.eq.f32.partialorder %v716_v32, 8.507059e+37 }
 0x205   :  { %v695_v59 = vmul.f32 %v3481_v55, %v694_v48 }
 0x206   :  { %v3483_v40 = vpop.eup %3482  ;;  %v681_v49 = vadd.f32 %v3479_v6, %v680_v21 }
 0x207   :  { %v708_v60 = vmul.f32 %v3483_v40, %v676_v54  ;;  %v696_v5 = vadd.f32 %v3481_v55, %v695_v59  ;;  %v3485_v24 = vpop.eup %3484  ;;  %vm713_vm2 = vweird.f32 %v3483_v40 }
 0x208   :  { %v685_v63 = vsel %vm684_vm14, %v3479_v6, %v681_v49  ;;  %vm714_vm4 = vmor %vm712_vm3, %vm713_vm2 }
 0x209   :  { %v709_v56 = vsub.f32 1.0, %v708_v60  ;;  %v690_v20 = vsel %vm687_vm0, %v689_v62, %v685_v63  ;;  %v700_v0 = vsel %vm699_vm15, %v3481_v55, %v696_v5 }
 0x20a   :  { %v705_v9 = vsel %vm702_vm1, %v704_v38, %v700_v0  ;;  %v727_v19 = vmul.f32 %v3485_v24, %v690_v20 }
 0x20b   :  { %v726_v48 = vmul.f32 %v724_v36, %v705_v9  ;;  %v710_v29 = vmul.f32 %v3483_v40, %v709_v56 }
 0x20d   :  { %v4005_v28 = vadd.f32 %v727_v19, %v726_v48  ;;  %v711_v21 = vadd.f32 %v3483_v40, %v710_v29 }
 0x20f   :  { %3486 = vtanh.f32 %v4005_v28  ;;  %v715_v6 = vsel %vm714_vm4, %v3483_v40, %v711_v21 }
 0x210   :  { %v720_v55 = vsel %vm717_vm5, %v719_v58, %v715_v6 }
 0x215   :  { %v3487_v46 = vpop.eup %3486 }
 0x216   :  { %v730_v59 = vmul.f32 %v3487_v46, %v720_v55 }
 0x218   :  { %v731_v44 = vpack.c.bf16 %v730_v59, %v730_v59 }
 0x21a   :  { %v733_v49 = vrot.slane %v731_v44, 2 }
 0x21c   :  { %743 = vmatmul.bf16.vlgmr.msrb.gmra.mxu0 %v733_v49  ;;  %756 = vmatmul.bf16.vlgmr.msrb.gmra.mxu1 %v733_v49 }
 0x21d   :  { %769 = vmatmul.bf16.vlgmr.msrb.gmra.mxu2 %v733_v49  ;;  %782 = vmatmul.bf16.vlgmr.msrb.gmra.mxu3 %v733_v49 }
 0x21e   :  { %996 = vmatpush.bf16.msrb.mxu0 %v3745_v10  ;;  %1009 = vmatpush.bf16.msrb.mxu1 %v3747_v14 }
 0x21f   :  { %1022 = vmatpush.bf16.msrb.mxu2 %v3749_v15  ;;  %1035 = vmatpush.bf16.msrb.mxu3 %v3752_v18 }
 0x222   :  { %997 = vmatpush.bf16.msrb.mxu0 %v3757_v22  ;;  %1010 = vmatpush.bf16.msrb.mxu1 %v3759_v26 }
 0x223   :  { %1023 = vmatpush.bf16.msrb.mxu2 %v3761_v27  ;;  %1036 = vmatpush.bf16.msrb.mxu3 %v3764_v30 }
 0x226   :  { %998 = vmatpush.bf16.msrb.mxu0 %v3769_v33  ;;  %1011 = vmatpush.bf16.msrb.mxu1 %v3771_v37 }
 0x227   :  { %1024 = vmatpush.bf16.msrb.mxu2 %v3779_v42  ;;  %1037 = vmatpush.bf16.msrb.mxu3 %v3781_v43 }
 0x22a   :  { %999 = vmatpush.bf16.msrb.mxu0 %v3786_v47  ;;  %1012 = vmatpush.bf16.msrb.mxu1 %v3788_v51 }
 0x22b   :  { %1025 = vmatpush.bf16.msrb.mxu2 %v3790_v52  ;;  %1038 = vmatpush.bf16.msrb.mxu3 %v3795_v57 }
 0x22e   :  { %1000 = vmatpush.bf16.msrb.mxu0 %v3800_v61  ;;  %1013 = vmatpush.bf16.msrb.mxu1 %v3802_v1 }
 0x22f   :  { %1026 = vmatpush.bf16.msrb.mxu2 %v3804_v2  ;;  %1039 = vmatpush.bf16.msrb.mxu3 %v3807_v7 }
 0x232   :  { %1001 = vmatpush.bf16.msrb.mxu0 %v3814_v16  ;;  %1014 = vmatpush.bf16.msrb.mxu1 %v3816_v17 }
 0x233   :  { %1027 = vmatpush.bf16.msrb.mxu2 %v3825_v25  ;;  %1040 = vmatpush.bf16.msrb.mxu3 %v3831_v34 }
 0x236   :  { %1002 = vmatpush.bf16.msrb.mxu0 %v3838_v39  ;;  %1015 = vmatpush.bf16.msrb.mxu1 %v3842_v45 }
 0x237   :  { %1028 = vmatpush.bf16.msrb.mxu2 %v3846_v50  ;;  %1041 = vmatpush.bf16.msrb.mxu3 %v3848_v53 }
 0x23a   :  { %1003 = vmatpush.bf16.msrb.mxu0 %v3855_v4  ;;  %1016 = vmatpush.bf16.msrb.mxu1 %v3858_v8 }
 0x23b   :  { %1029 = vmatpush.bf16.msrb.mxu2 %v3863_v11  ;;  %1042 = vmatpush.bf16.msrb.mxu3 %v3865_v13 }
 0x299   :  { %v744_v54 = vpop.f32.mrf.mxu0  ;;  %v757_v40 = vpop.f32.mrf.mxu1 }
 0x29a   :  { %v791_v60 = vrot.slane %v744_v54, 2  ;;  %v792_v62 = vrot.slane %v757_v40, 2 }
 0x29c   :  { %v799_v5 = vadd.f32 %v791_v60, %v3811_v12  ;;  %v800_v36 = vadd.f32 %v792_v62, %v3820_v23 }
 0x29e   :  { %v2745_v38 = vmul.f32 -1.442695, %v799_v5  ;;  %v2746_v63 = vmul.f32 -1.442695, %v800_v36 }
 0x2a0   :  { %3488 = vpow2.f32 %v2745_v38  ;;  %v770_v24 = vpop.f32.mrf.mxu2  ;;  %v783_v56 = vpop.f32.mrf.mxu3 }
 0x2a1   :  { %3490 = vpow2.f32 %v2746_v63  ;;  %v793_v20 = vrot.slane %v770_v24, 2  ;;  %v746_v0 = vpop.f32.mrf.mxu0  ;;  %v759_v9 = vpop.f32.mrf.mxu1  ;;  %v794_v23 = vrot.slane %v783_v56, 2 }
 0x2a2   :  { %v862_v9 = vrot.slane %v4005_v28, 6 }
 0x2a3   :  { %v801_v19 = vadd.f32 %v793_v20, %v3852_v3  ;;  %v802_v59 = vadd.f32 %v794_v23, %v3879_v35 }
 0x2a5   :  { %v2747_v48 = vmul.f32 -1.442695, %v801_v19 }
 0x2a6   :  { %v3489_v29 = vpop.eup %3488 }
 0x2a7   :  { %v3491_v21 = vpop.eup %3490  ;;  %v812_v31 = vadd.f32 1.0, %v3489_v29  ;;  %3492 = vpow2.f32 %v2747_v48 }
 0x2a8   :  { %v813_v32 = vadd.f32 1.0, %v3491_v21  ;;  %v772_v12 = vpop.f32.mrf.mxu2  ;;  %v785_v6 = vpop.f32.mrf.mxu3 }
 0x2a9   :  { %3494 = vrcp.f32 %v812_v31  ;;  %v826_v60 = vand.u32 2147483648, %v812_v31  ;;  %v824_v36 = vand.u32 2147483647, %v812_v31  ;;  %vm820_vm8 = vweird.f32 %v812_v31 }
 0x2aa   :  { %3496 = vrcp.f32 %v813_v32  ;;  %v841_v62 = vand.u32 2147483648, %v813_v32  ;;  %v839_v63 = vand.u32 2147483647, %v813_v32  ;;  %vm835_vm9 = vweird.f32 %v813_v32 }
 0x2ab   :  { %v827_v20 = vor.u32 1.1754944e-38, %v826_v60  ;;  %vm825_vm12 = vcmp.eq.f32.partialorder %v824_v36, 8.507059e+37  ;;  %v4222_v36 = vld [vmem:[#allocation19_spill] sm:$0xff] }
 0x2ac   :  { %v842_v19 = vor.u32 1.1754944e-38, %v841_v62  ;;  %vm840_vm13 = vcmp.eq.f32.partialorder %v839_v63, 8.507059e+37  ;;  %v4223_v63 = vperm.slane %v3776_v41, 1 }
 0x2ad   :  { %v3493_v58 = vpop.eup %3492 }
 0x2ae   :  { %v814_v46 = vadd.f32 1.0, %v3493_v58 }
 0x2af   :  { %v3495_v55 = vpop.eup %3494 }
 0x2b0   :  { %v3497_v44 = vpop.eup %3496  ;;  %v816_v49 = vmul.f32 %v3495_v55, %v812_v31  ;;  %3498 = vrcp.f32 %v814_v46  ;;  %vm821_vm6 = vweird.f32 %v3495_v55  ;;  %v856_v28 = vand.u32 2147483648, %v814_v46 }
 0x2b1   :  { %v831_v3 = vmul.f32 %v3497_v44, %v813_v32  ;;  %3500 = vtanh.f32 %v802_v59  ;;  %vm836_vm7 = vweird.f32 %v3497_v44  ;;  %vm822_vm10 = vmor %vm820_vm8, %vm821_vm6  ;;  %vm850_vm15 = vweird.f32 %v814_v46 }
 0x2b2   :  { %v817_v54 = vsub.f32 1.0, %v816_v49  ;;  %vm837_vm11 = vmor %vm835_vm9, %vm836_vm7 }
 0x2b3   :  { %v832_v40 = vsub.f32 1.0, %v831_v3  ;;  %v854_v3 = vand.u32 2147483647, %v814_v46 }
 0x2b4   :  { %v818_v5 = vmul.f32 %v3495_v55, %v817_v54  ;;  %v857_v54 = vor.u32 1.1754944e-38, %v856_v28 }
 0x2b5   :  { %v833_v38 = vmul.f32 %v3497_v44, %v832_v40  ;;  %vm855_vm1 = vcmp.eq.f32.partialorder %v854_v3, 8.507059e+37 }
 0x2b6   :  { %v3499_v24 = vpop.eup %3498  ;;  %v819_v56 = vadd.f32 %v3495_v55, %v818_v5 }
 0x2b7   :  { %v846_v35 = vmul.f32 %v3499_v24, %v814_v46  ;;  %v834_v0 = vadd.f32 %v3497_v44, %v833_v38  ;;  %v3501_v29 = vpop.eup %3500  ;;  %vm851_vm14 = vweird.f32 %v3499_v24  ;;  %v4221_v46 = vperm.slane %v3776_v41, 0 }
 0x2b8   :  { %v823_v48 = vsel %vm822_vm10, %v3495_v55, %v819_v56  ;;  %vm852_vm0 = vmor %vm850_vm15, %vm851_vm14 }
 0x2b9   :  { %v847_v21 = vsub.f32 1.0, %v846_v35  ;;  %v828_v12 = vsel %vm825_vm12, %v827_v20, %v823_v48  ;;  %v838_v6 = vsel %vm837_vm11, %v3497_v44, %v834_v0  ;;  %v4083_v38 = vadd.f32 %v4222_v36, %v4221_v46 }
 0x2ba   :  { %v843_v23 = vsel %vm840_vm13, %v842_v19, %v838_v6  ;;  %v865_v58 = vmul.f32 %v3501_v29, %v828_v12  ;;  %v4225_v29 = vperm.slane %v3776_v41, 2 }
 0x2bb   :  { %v864_v59 = vmul.f32 %v862_v9, %v843_v23  ;;  %v848_v31 = vmul.f32 %v3499_v24, %v847_v21  ;;  %v4226_v21 = vld [vmem:[#allocation21_spill] sm:$0xff] }
 0x2bc   :  { %v4095_v12 = vadd.f32 %v4226_v21, %v4225_v29 }
 0x2bd   :  { %v4045_v32 = vadd.f32 %v865_v58, %v864_v59  ;;  %v849_v49 = vadd.f32 %v3499_v24, %v848_v31 }
 0x2bf   :  { %3502 = vtanh.f32 %v4045_v32  ;;  %v853_v55 = vsel %vm852_vm0, %v3499_v24, %v849_v49  ;;  %v4224_v24 = vld [vmem:[#allocation20_spill] sm:$0xff] }
 0x2c0   :  { %v858_v44 = vsel %vm855_vm1, %v857_v54, %v853_v55  ;;  %v4088_v56 = vadd.f32 %v4224_v24, %v4223_v63 }
 0x2c5   :  { %v3503_v40 = vpop.eup %3502 }
 0x2c6   :  { %v868_v60 = vmul.f32 %v3503_v40, %v858_v44 }
 0x2c8   :  { %v869_v62 = vpack.c.bf16 %v868_v60, %v868_v60 }
 0x2ca   :  { %v871_v5 = vrot.slane %v869_v62, 3  ;;  %v4227_v62 = vperm.slane %v3776_v41, 3 }
 0x2cc   :  { %881 = vmatmul.bf16.vlgmr.msra.gmra.mxu0 %v871_v5  ;;  %894 = vmatmul.bf16.vlgmr.msra.gmra.mxu1 %v871_v5 }
 0x2cd   :  { %907 = vmatmul.bf16.vlgmr.msra.gmra.mxu2 %v871_v5  ;;  %920 = vmatmul.bf16.vlgmr.msra.gmra.mxu3 %v871_v5  ;;  %v4228_v5 = vld [vmem:[#allocation22_spill] sm:$0xff] }
 0x2ce   :  { %1134 = vmatpush.bf16.msra.mxu0 %v3745_v10  ;;  %1147 = vmatpush.bf16.msra.mxu1 %v3747_v14  ;;  %v4101_v46 = vadd.f32 %v4228_v5, %v4227_v62 }
 0x2cf   :  { %1160 = vmatpush.bf16.msra.mxu2 %v3749_v15  ;;  %1173 = vmatpush.bf16.msra.mxu3 %v3752_v18 }
 0x2d2   :  { %1135 = vmatpush.bf16.msra.mxu0 %v3757_v22  ;;  %1148 = vmatpush.bf16.msra.mxu1 %v3759_v26 }
 0x2d3   :  { %1161 = vmatpush.bf16.msra.mxu2 %v3761_v27  ;;  %1174 = vmatpush.bf16.msra.mxu3 %v3764_v30 }
 0x2d6   :  { %1136 = vmatpush.bf16.msra.mxu0 %v3769_v33  ;;  %1149 = vmatpush.bf16.msra.mxu1 %v3771_v37 }
 0x2d7   :  { %1162 = vmatpush.bf16.msra.mxu2 %v3779_v42  ;;  %1175 = vmatpush.bf16.msra.mxu3 %v3781_v43 }
 0x2da   :  { %1137 = vmatpush.bf16.msra.mxu0 %v3786_v47  ;;  %1150 = vmatpush.bf16.msra.mxu1 %v3788_v51 }
 0x2db   :  { %1163 = vmatpush.bf16.msra.mxu2 %v3790_v52  ;;  %1176 = vmatpush.bf16.msra.mxu3 %v3795_v57 }
 0x2de   :  { %1138 = vmatpush.bf16.msra.mxu0 %v3800_v61  ;;  %1151 = vmatpush.bf16.msra.mxu1 %v3802_v1 }
 0x2df   :  { %1164 = vmatpush.bf16.msra.mxu2 %v3804_v2  ;;  %1177 = vmatpush.bf16.msra.mxu3 %v3807_v7 }
 0x2e2   :  { %1139 = vmatpush.bf16.msra.mxu0 %v3814_v16  ;;  %1152 = vmatpush.bf16.msra.mxu1 %v3816_v17 }
 0x2e3   :  { %1165 = vmatpush.bf16.msra.mxu2 %v3825_v25  ;;  %1178 = vmatpush.bf16.msra.mxu3 %v3831_v34 }
 0x2e6   :  { %1140 = vmatpush.bf16.msra.mxu0 %v3838_v39  ;;  %1153 = vmatpush.bf16.msra.mxu1 %v3842_v45 }
 0x2e7   :  { %1166 = vmatpush.bf16.msra.mxu2 %v3846_v50  ;;  %1179 = vmatpush.bf16.msra.mxu3 %v3848_v53 }
 0x2ea   :  { %1141 = vmatpush.bf16.msra.mxu0 %v3855_v4  ;;  %1154 = vmatpush.bf16.msra.mxu1 %v3858_v8 }
 0x2eb   :  { %1167 = vmatpush.bf16.msra.mxu2 %v3863_v11  ;;  %1180 = vmatpush.bf16.msra.mxu3 %v3865_v13 }
 0x349   :  { %v882_v35 = vpop.f32.mrf.mxu0  ;;  %v895_v20 = vpop.f32.mrf.mxu1 }
 0x34a   :  { %v925_v0 = vadd.f32 %v882_v35, %v4083_v38  ;;  %v926_v9 = vadd.f32 %v895_v20, %v4088_v56 }
 0x34c   :  { %v2748_v19 = vmul.f32 -1.442695, %v925_v0  ;;  %v2749_v48 = vmul.f32 -1.442695, %v926_v9 }
 0x34e   :  { %3504 = vpow2.f32 %v2748_v19 }
 0x34f   :  { %3506 = vpow2.f32 %v2749_v48 }
 0x350   :  { %v908_v6 = vpop.f32.mrf.mxu2  ;;  %v921_v23 = vpop.f32.mrf.mxu3 }
 0x351   :  { %v927_v58 = vadd.f32 %v908_v6, %v4095_v12  ;;  %v884_v59 = vpop.f32.mrf.mxu0  ;;  %v897_v31 = vpop.f32.mrf.mxu1  ;;  %v928_v24 = vadd.f32 %v921_v23, %v4101_v46 }
 0x353   :  { %v2750_v49 = vmul.f32 -1.442695, %v927_v58 }
 0x354   :  { %v3505_v28 = vpop.eup %3504 }
 0x355   :  { %v3507_v3 = vpop.eup %3506  ;;  %v938_v55 = vadd.f32 1.0, %v3505_v28  ;;  %3508 = vpow2.f32 %v2750_v49 }
 0x356   :  { %v939_v54 = vadd.f32 1.0, %v3507_v3 }
 0x357   :  { %3510 = vrcp.f32 %v938_v55  ;;  %v952_v48 = vand.u32 2147483648, %v938_v55  ;;  %v950_v6 = vand.u32 2147483647, %v938_v55  ;;  %vm946_vm4 = vweird.f32 %v938_v55 }
 0x358   :  { %3512 = vrcp.f32 %v939_v54  ;;  %v910_v40 = vpop.f32.mrf.mxu2  ;;  %v923_v44 = vpop.f32.mrf.mxu3  ;;  %v967_v29 = vand.u32 2147483648, %v939_v54  ;;  %v965_v58 = vand.u32 2147483647, %v939_v54  ;;  %vm961_vm5 = vweird.f32 %v939_v54 }
 0x359   :  { %v953_v49 = vor.u32 1.1754944e-38, %v952_v48  ;;  %vm951_vm8 = vcmp.eq.f32.partialorder %v950_v6, 8.507059e+37  ;;  %v988_v44 = vrot.slane %v4045_v32, 6 }
 0x35a   :  { %v968_v3 = vor.u32 1.1754944e-38, %v967_v29  ;;  %vm966_vm9 = vcmp.eq.f32.partialorder %v965_v58, 8.507059e+37 }
 0x35b   :  { %v3509_v60 = vpop.eup %3508 }
 0x35c   :  { %v940_v36 = vadd.f32 1.0, %v3509_v60 }
 0x35d   :  { %v3511_v63 = vpop.eup %3510 }
 0x35e   :  { %v3513_v35 = vpop.eup %3512  ;;  %v942_v20 = vmul.f32 %v3511_v63, %v938_v55  ;;  %3514 = vrcp.f32 %v940_v36  ;;  %vm947_vm2 = vweird.f32 %v3511_v63  ;;  %v982_v48 = vand.u32 2147483648, %v940_v36 }
 0x35f   :  { %v957_v0 = vmul.f32 %v3513_v35, %v939_v54  ;;  %3516 = vtanh.f32 %v928_v24  ;;  %vm962_vm3 = vweird.f32 %v3513_v35  ;;  %vm948_vm6 = vmor %vm946_vm4, %vm947_vm2  ;;  %vm976_vm11 = vweird.f32 %v940_v36 }
 0x360   :  { %v943_v9 = vsub.f32 1.0, %v942_v20  ;;  %vm963_vm7 = vmor %vm961_vm5, %vm962_vm3  ;;  %v983_v29 = vor.u32 1.1754944e-38, %v982_v48 }
 0x361   :  { %v958_v19 = vsub.f32 1.0, %v957_v0 }
 0x362   :  { %v944_v21 = vmul.f32 %v3511_v63, %v943_v9 }
 0x363   :  { %v959_v41 = vmul.f32 %v3513_v35, %v958_v19 }
 0x364   :  { %v3515_v59 = vpop.eup %3514  ;;  %v945_v31 = vadd.f32 %v3511_v63, %v944_v21 }
 0x365   :  { %v972_v23 = vmul.f32 %v3515_v59, %v940_v36  ;;  %v960_v28 = vadd.f32 %v3513_v35, %v959_v41  ;;  %v3517_v60 = vpop.eup %3516  ;;  %vm977_vm10 = vweird.f32 %v3515_v59 }
 0x366   :  { %v949_v40 = vsel %vm948_vm6, %v3511_v63, %v945_v31  ;;  %v980_v63 = vand.u32 2147483647, %v940_v36  ;;  %vm978_vm12 = vmor %vm976_vm11, %vm977_vm10 }
 0x367   :  { %v973_v62 = vsub.f32 1.0, %v972_v23  ;;  %v954_v5 = vsel %vm951_vm8, %v953_v49, %v949_v40  ;;  %v964_v24 = vsel %vm963_vm7, %v3513_v35, %v960_v28 }
 0x368   :  { %v969_v20 = vsel %vm966_vm9, %v968_v3, %v964_v24  ;;  %v991_v0 = vmul.f32 %v3517_v60, %v954_v5  ;;  %vm981_vm13 = vcmp.eq.f32.partialorder %v980_v63, 8.507059e+37 }
 0x369   :  { %v990_v9 = vmul.f32 %v988_v44, %v969_v20  ;;  %v974_v55 = vmul.f32 %v3515_v59, %v973_v62 }
 0x36b   :  { %v4105_v54 = vadd.f32 %v991_v0, %v990_v9  ;;  %v975_v19 = vadd.f32 %v3515_v59, %v974_v55 }
 0x36d   :  { %3518 = vtanh.f32 %v4105_v54  ;;  %v979_v32 = vsel %vm978_vm12, %v3515_v59, %v975_v19  ;;  %v1123_v60 = vrot.slane %v4105_v54, 6 }
 0x36e   :  { %v984_v35 = vsel %vm981_vm13, %v983_v29, %v979_v32 }
 0x373   :  { %v3519_v21 = vpop.eup %3518 }
 0x374   :  { %v994_v6 = vmul.f32 %v3519_v21, %v984_v35 }
 0x376   :  { %v995_v41 = vpack.c.bf16 %v994_v6, %v994_v6 }
 0x378   :  { %1004 = vmatmul.bf16.vlgmr.msrb.gmra.mxu0 %v995_v41  ;;  %1017 = vmatmul.bf16.vlgmr.msrb.gmra.mxu1 %v995_v41 }
 0x379   :  { %1030 = vmatmul.bf16.vlgmr.msrb.gmra.mxu2 %v995_v41  ;;  %1043 = vmatmul.bf16.vlgmr.msrb.gmra.mxu3 %v995_v41 }
 0x37a   :  { %1272 = vmatpush.bf16.msrb.mxu0 %v3745_v10  ;;  %1285 = vmatpush.bf16.msrb.mxu1 %v3747_v14 }
 0x37b   :  { %1298 = vmatpush.bf16.msrb.mxu2 %v3749_v15  ;;  %1311 = vmatpush.bf16.msrb.mxu3 %v3752_v18 }
 0x37e   :  { %1273 = vmatpush.bf16.msrb.mxu0 %v3757_v22  ;;  %1286 = vmatpush.bf16.msrb.mxu1 %v3759_v26 }
 0x37f   :  { %1299 = vmatpush.bf16.msrb.mxu2 %v3761_v27  ;;  %1312 = vmatpush.bf16.msrb.mxu3 %v3764_v30 }
 0x382   :  { %1274 = vmatpush.bf16.msrb.mxu0 %v3769_v33  ;;  %1287 = vmatpush.bf16.msrb.mxu1 %v3771_v37 }
 0x383   :  { %1300 = vmatpush.bf16.msrb.mxu2 %v3779_v42  ;;  %1313 = vmatpush.bf16.msrb.mxu3 %v3781_v43 }
 0x386   :  { %1275 = vmatpush.bf16.msrb.mxu0 %v3786_v47  ;;  %1288 = vmatpush.bf16.msrb.mxu1 %v3788_v51 }
 0x387   :  { %1301 = vmatpush.bf16.msrb.mxu2 %v3790_v52  ;;  %1314 = vmatpush.bf16.msrb.mxu3 %v3795_v57 }
 0x38a   :  { %1276 = vmatpush.bf16.msrb.mxu0 %v3800_v61  ;;  %1289 = vmatpush.bf16.msrb.mxu1 %v3802_v1 }
 0x38b   :  { %1302 = vmatpush.bf16.msrb.mxu2 %v3804_v2  ;;  %1315 = vmatpush.bf16.msrb.mxu3 %v3807_v7 }
 0x38e   :  { %1277 = vmatpush.bf16.msrb.mxu0 %v3814_v16  ;;  %1290 = vmatpush.bf16.msrb.mxu1 %v3816_v17 }
 0x38f   :  { %1303 = vmatpush.bf16.msrb.mxu2 %v3825_v25  ;;  %1316 = vmatpush.bf16.msrb.mxu3 %v3831_v34 }
 0x392   :  { %1278 = vmatpush.bf16.msrb.mxu0 %v3838_v39  ;;  %1291 = vmatpush.bf16.msrb.mxu1 %v3842_v45 }
 0x393   :  { %1304 = vmatpush.bf16.msrb.mxu2 %v3846_v50  ;;  %1317 = vmatpush.bf16.msrb.mxu3 %v3848_v53 }
 0x396   :  { %1279 = vmatpush.bf16.msrb.mxu0 %v3855_v4  ;;  %1292 = vmatpush.bf16.msrb.mxu1 %v3858_v8 }
 0x397   :  { %1305 = vmatpush.bf16.msrb.mxu2 %v3863_v11  ;;  %1318 = vmatpush.bf16.msrb.mxu3 %v3865_v13 }
 0x3f5   :  { %v1005_v10 = vpop.f32.mrf.mxu0  ;;  %v1018_v14 = vpop.f32.mrf.mxu1 }
 0x3f6   :  { %v1052_v15 = vrot.slane %v1005_v10, 6  ;;  %v1053_v18 = vrot.slane %v1018_v14, 6 }
 0x3f8   :  { %v1060_v22 = vadd.f32 %v1052_v15, %v4083_v38  ;;  %v1061_v26 = vadd.f32 %v1053_v18, %v4088_v56 }
 0x3fa   :  { %v2751_v27 = vmul.f32 -1.442695, %v1060_v22  ;;  %v2752_v30 = vmul.f32 -1.442695, %v1061_v26 }
 0x3fc   :  { %3520 = vpow2.f32 %v2751_v27  ;;  %v1031_v33 = vpop.f32.mrf.mxu2  ;;  %v1044_v37 = vpop.f32.mrf.mxu3 }
 0x3fd   :  { %3522 = vpow2.f32 %v2752_v30  ;;  %v1054_v42 = vrot.slane %v1031_v33, 6  ;;  %v1007_v43 = vpop.f32.mrf.mxu0  ;;  %v1020_v47 = vpop.f32.mrf.mxu1  ;;  %v1055_v17 = vrot.slane %v1044_v37, 6 }
 0x3ff   :  { %v1062_v51 = vadd.f32 %v1054_v42, %v4095_v12  ;;  %v1063_v45 = vadd.f32 %v1055_v17, %v4101_v46 }
 0x401   :  { %v2753_v52 = vmul.f32 -1.442695, %v1062_v51 }
 0x402   :  { %v3521_v57 = vpop.eup %3520 }
 0x403   :  { %v3523_v61 = vpop.eup %3522  ;;  %v1073_v1 = vadd.f32 1.0, %v3521_v57  ;;  %3524 = vpow2.f32 %v2753_v52 }
 0x404   :  { %v1074_v2 = vadd.f32 1.0, %v3523_v61  ;;  %v1033_v7 = vpop.f32.mrf.mxu2  ;;  %v1046_v16 = vpop.f32.mrf.mxu3 }
 0x405   :  { %3526 = vrcp.f32 %v1073_v1  ;;  %v1087_v13 = vand.u32 2147483648, %v1073_v1  ;;  %v1085_v59 = vand.u32 2147483647, %v1073_v1  ;;  %vm1081_vm0 = vweird.f32 %v1073_v1 }
 0x406   :  { %3528 = vrcp.f32 %v1074_v2  ;;  %v1102_v36 = vand.u32 2147483648, %v1074_v2  ;;  %v1100_v23 = vand.u32 2147483647, %v1074_v2  ;;  %vm1096_vm1 = vweird.f32 %v1074_v2 }
 0x407   :  { %v1088_v40 = vor.u32 1.1754944e-38, %v1087_v13  ;;  %vm1086_vm4 = vcmp.eq.f32.partialorder %v1085_v59, 8.507059e+37 }
 0x408   :  { %v1103_v62 = vor.u32 1.1754944e-38, %v1102_v36  ;;  %vm1101_vm5 = vcmp.eq.f32.partialorder %v1100_v23, 8.507059e+37 }
 0x409   :  { %v3525_v25 = vpop.eup %3524 }
 0x40a   :  { %v1075_v34 = vadd.f32 1.0, %v3525_v25 }
 0x40b   :  { %v3527_v39 = vpop.eup %3526 }
 0x40c   :  { %v3529_v50 = vpop.eup %3528  ;;  %v1077_v53 = vmul.f32 %v3527_v39, %v1073_v1  ;;  %3530 = vrcp.f32 %v1075_v34  ;;  %vm1082_vm14 = vweird.f32 %v3527_v39  ;;  %v1117_v54 = vand.u32 2147483648, %v1075_v34 }
 0x40d   :  { %v1092_v4 = vmul.f32 %v3529_v50, %v1074_v2  ;;  %3532 = vtanh.f32 %v1063_v45  ;;  %vm1097_vm15 = vweird.f32 %v3529_v50  ;;  %vm1083_vm2 = vmor %vm1081_vm0, %vm1082_vm14  ;;  %vm1111_vm7 = vweird.f32 %v1075_v34 }
 0x40e   :  { %v1078_v8 = vsub.f32 1.0, %v1077_v53  ;;  %vm1098_vm3 = vmor %vm1096_vm1, %vm1097_vm15  ;;  %v1115_v21 = vand.u32 2147483647, %v1075_v34  ;;  %v1118_v6 = vor.u32 1.1754944e-38, %v1117_v54 }
 0x40f   :  { %v1093_v11 = vsub.f32 1.0, %v1092_v4 }
 0x410   :  { %v1079_v58 = vmul.f32 %v3527_v39, %v1078_v8  ;;  %vm1116_vm9 = vcmp.eq.f32.partialorder %v1115_v21, 8.507059e+37 }
 0x411   :  { %v1094_v31 = vmul.f32 %v3529_v50, %v1093_v11 }
 0x412   :  { %v3531_v49 = vpop.eup %3530  ;;  %v1080_v28 = vadd.f32 %v3527_v39, %v1079_v58 }
 0x413   :  { %v1107_v3 = vmul.f32 %v3531_v49, %v1075_v34  ;;  %v1095_v44 = vadd.f32 %v3529_v50, %v1094_v31  ;;  %v3533_v24 = vpop.eup %3532  ;;  %vm1112_vm6 = vweird.f32 %v3531_v49 }
 0x414   :  { %v1084_v5 = vsel %vm1083_vm2, %v3527_v39, %v1080_v28  ;;  %vm1113_vm8 = vmor %vm1111_vm7, %vm1112_vm6 }
 0x415   :  { %v1108_v20 = vsub.f32 1.0, %v1107_v3  ;;  %v1089_v0 = vsel %vm1086_vm4, %v1088_v40, %v1084_v5  ;;  %v1099_v9 = vsel %vm1098_vm3, %v3529_v50, %v1095_v44 }
 0x416   :  { %v1104_v55 = vsel %vm1101_vm5, %v1103_v62, %v1099_v9  ;;  %v1126_v19 = vmul.f32 %v3533_v24, %v1089_v0 }
 0x417   :  { %v1125_v48 = vmul.f32 %v1123_v60, %v1104_v55  ;;  %v1109_v63 = vmul.f32 %v3531_v49, %v1108_v20 }
 0x419   :  { %v4145_v32 = vadd.f32 %v1126_v19, %v1125_v48  ;;  %v1110_v29 = vadd.f32 %v3531_v49, %v1109_v63 }
 0x41b   :  { %3534 = vtanh.f32 %v4145_v32  ;;  %v1114_v35 = vsel %vm1113_vm8, %v3531_v49, %v1110_v29  ;;  %v1261_v20 = vrot.slane %v4145_v32, 6 }
 0x41c   :  { %v1119_v10 = vsel %vm1116_vm9, %v1118_v6, %v1114_v35 }
 0x421   :  { %v3535_v41 = vpop.eup %3534 }
 0x422   :  { %v1129_v14 = vmul.f32 %v3535_v41, %v1119_v10 }
 0x424   :  { %v1130_v15 = vpack.c.bf16 %v1129_v14, %v1129_v14 }
 0x426   :  { %v1132_v18 = vrot.slane %v1130_v15, 1 }
 0x428   :  { %1142 = vmatmul.bf16.vlgmr.msra.gmra.mxu0 %v1132_v18  ;;  %1155 = vmatmul.bf16.vlgmr.msra.gmra.mxu1 %v1132_v18 }
 0x429   :  { %1168 = vmatmul.bf16.vlgmr.msra.gmra.mxu2 %v1132_v18  ;;  %1181 = vmatmul.bf16.vlgmr.msra.gmra.mxu3 %v1132_v18 }
 0x4a5   :  { %v1143_v22 = vpop.f32.mrf.mxu0  ;;  %v1156_v26 = vpop.f32.mrf.mxu1 }
 0x4a6   :  { %v1190_v27 = vrot.slane %v1143_v22, 4  ;;  %v1191_v30 = vrot.slane %v1156_v26, 4 }
 0x4a8   :  { %v1198_v33 = vadd.f32 %v1190_v27, %v4083_v38  ;;  %v1199_v37 = vadd.f32 %v1191_v30, %v4088_v56 }
 0x4aa   :  { %v2754_v42 = vmul.f32 -1.442695, %v1198_v33  ;;  %v2755_v43 = vmul.f32 -1.442695, %v1199_v37 }
 0x4ac   :  { %3536 = vpow2.f32 %v2754_v42  ;;  %v1169_v47 = vpop.f32.mrf.mxu2  ;;  %v1182_v51 = vpop.f32.mrf.mxu3 }
 0x4ad   :  { %3538 = vpow2.f32 %v2755_v43  ;;  %v1192_v52 = vrot.slane %v1169_v47, 4  ;;  %v1145_v57 = vpop.f32.mrf.mxu0  ;;  %v1158_v61 = vpop.f32.mrf.mxu1  ;;  %v1193_v45 = vrot.slane %v1182_v51, 4 }
 0x4af   :  { %v1200_v1 = vadd.f32 %v1192_v52, %v4095_v12  ;;  %v1201_v8 = vadd.f32 %v1193_v45, %v4101_v46 }
 0x4b1   :  { %v2756_v2 = vmul.f32 -1.442695, %v1200_v1 }
 0x4b2   :  { %v3537_v7 = vpop.eup %3536 }
 0x4b3   :  { %v3539_v16 = vpop.eup %3538  ;;  %v1211_v17 = vadd.f32 1.0, %v3537_v7  ;;  %3540 = vpow2.f32 %v2756_v2 }
 0x4b4   :  { %v1212_v25 = vadd.f32 1.0, %v3539_v16  ;;  %v1171_v34 = vpop.f32.mrf.mxu2  ;;  %v1184_v39 = vpop.f32.mrf.mxu3 }
 0x4b5   :  { %3542 = vrcp.f32 %v1211_v17  ;;  %v1225_v31 = vand.u32 2147483648, %v1211_v17  ;;  %v1223_v28 = vand.u32 2147483647, %v1211_v17  ;;  %vm1219_vm12 = vweird.f32 %v1211_v17 }
 0x4b6   :  { %3544 = vrcp.f32 %v1212_v25  ;;  %v1240_v23 = vand.u32 2147483648, %v1212_v25  ;;  %v1238_v40 = vand.u32 2147483647, %v1212_v25  ;;  %vm1234_vm13 = vweird.f32 %v1212_v25 }
 0x4b7   :  { %v1226_v5 = vor.u32 1.1754944e-38, %v1225_v31  ;;  %vm1224_vm0 = vcmp.eq.f32.partialorder %v1223_v28, 8.507059e+37 }
 0x4b8   :  { %v1241_v0 = vor.u32 1.1754944e-38, %v1240_v23  ;;  %vm1239_vm1 = vcmp.eq.f32.partialorder %v1238_v40, 8.507059e+37 }
 0x4b9   :  { %v3541_v50 = vpop.eup %3540 }
 0x4ba   :  { %v1213_v53 = vadd.f32 1.0, %v3541_v50 }
 0x4bb   :  { %v3543_v4 = vpop.eup %3542 }
 0x4bc   :  { %v3545_v11 = vpop.eup %3544  ;;  %v1215_v13 = vmul.f32 %v3543_v4, %v1211_v17  ;;  %3546 = vrcp.f32 %v1213_v53  ;;  %vm1220_vm10 = vweird.f32 %v3543_v4  ;;  %v1255_v32 = vand.u32 2147483648, %v1213_v53 }
 0x4bd   :  { %v1230_v36 = vmul.f32 %v3545_v11, %v1212_v25  ;;  %3548 = vtanh.f32 %v1201_v8  ;;  %vm1235_vm11 = vweird.f32 %v3545_v11  ;;  %vm1221_vm14 = vmor %vm1219_vm12, %vm1220_vm10  ;;  %vm1249_vm3 = vweird.f32 %v1213_v53 }
 0x4be   :  { %v1216_v58 = vsub.f32 1.0, %v1215_v13  ;;  %vm1236_vm15 = vmor %vm1234_vm13, %vm1235_vm11  ;;  %v1253_v10 = vand.u32 2147483647, %v1213_v53  ;;  %v1256_v15 = vor.u32 1.1754944e-38, %v1255_v32 }
 0x4bf   :  { %v1231_v59 = vsub.f32 1.0, %v1230_v36 }
 0x4c0   :  { %v1217_v49 = vmul.f32 %v3543_v4, %v1216_v58  ;;  %vm1254_vm5 = vcmp.eq.f32.partialorder %v1253_v10, 8.507059e+37 }
 0x4c1   :  { %v1232_v3 = vmul.f32 %v3545_v11, %v1231_v59 }
 0x4c2   :  { %v3547_v44 = vpop.eup %3546  ;;  %v1218_v60 = vadd.f32 %v3543_v4, %v1217_v49 }
 0x4c3   :  { %v1245_v62 = vmul.f32 %v3547_v44, %v1213_v53  ;;  %v1233_v24 = vadd.f32 %v3545_v11, %v1232_v3  ;;  %v3549_v55 = vpop.eup %3548  ;;  %vm1250_vm2 = vweird.f32 %v3547_v44 }
 0x4c4   :  { %v1222_v9 = vsel %vm1221_vm14, %v3543_v4, %v1218_v60  ;;  %vm1251_vm4 = vmor %vm1249_vm3, %vm1250_vm2 }
 0x4c5   :  { %v1246_v19 = vsub.f32 1.0, %v1245_v62  ;;  %v1227_v48 = vsel %vm1224_vm0, %v1226_v5, %v1222_v9  ;;  %v1237_v63 = vsel %vm1236_vm15, %v3545_v11, %v1233_v24 }
 0x4c6   :  { %v1242_v29 = vsel %vm1239_vm1, %v1241_v0, %v1237_v63  ;;  %v1264_v54 = vmul.f32 %v3549_v55, %v1227_v48 }
 0x4c7   :  { %v1263_v21 = vmul.f32 %v1261_v20, %v1242_v29  ;;  %v1247_v35 = vmul.f32 %v3547_v44, %v1246_v19 }
 0x4c9   :  { %v4153_v6 = vadd.f32 %v1264_v54, %v1263_v21  ;;  %v1248_v41 = vadd.f32 %v3547_v44, %v1247_v35 }
 0x4cb   :  { %3550 = vtanh.f32 %v4153_v6  ;;  %v1252_v14 = vsel %vm1251_vm4, %v3547_v44, %v1248_v41  ;;  %v1399_v20 = vrot.slane %v4153_v6, 6 }
 0x4cc   :  { %v1257_v22 = vsel %vm1254_vm5, %v1256_v15, %v1252_v14  ;;  %v1406_v14 = vld [vmem:[%s4204_s1] sm:$0x3] }
 0x4d1   :  { %v3551_v18 = vpop.eup %3550 }
 0x4d2   :  { %v1267_v26 = vmul.f32 %v3551_v18, %v1257_v22  ;;  %v1408_v22 = vrot.slane %v1406_v14, 2 }
 0x4d4   :  { %v1268_v27 = vpack.c.bf16 %v1267_v26, %v1267_v26 }
 0x4d6   :  { %v1270_v30 = vrot.slane %v1268_v27, 2 }
 0x4d8   :  { %1280 = vmatmul.bf16.vlgmr.msrb.gmra.mxu0 %v1270_v30  ;;  %1293 = vmatmul.bf16.vlgmr.msrb.gmra.mxu1 %v1270_v30 }
 0x4d9   :  { %1306 = vmatmul.bf16.vlgmr.msrb.gmra.mxu2 %v1270_v30  ;;  %1319 = vmatmul.bf16.vlgmr.msrb.gmra.mxu3 %v1270_v30 }
 0x555   :  { %v1281_v33 = vpop.f32.mrf.mxu0  ;;  %v1294_v37 = vpop.f32.mrf.mxu1 }
 0x556   :  { %v1328_v42 = vrot.slane %v1281_v33, 2  ;;  %v1329_v43 = vrot.slane %v1294_v37, 2 }
 0x558   :  { %v1336_v47 = vadd.f32 %v1328_v42, %v4083_v38  ;;  %v1337_v51 = vadd.f32 %v1329_v43, %v4088_v56 }
 0x55a   :  { %v2757_v52 = vmul.f32 -1.442695, %v1336_v47  ;;  %v2758_v57 = vmul.f32 -1.442695, %v1337_v51 }
 0x55c   :  { %3552 = vpow2.f32 %v2757_v52  ;;  %v1307_v61 = vpop.f32.mrf.mxu2  ;;  %v1320_v1 = vpop.f32.mrf.mxu3 }
 0x55d   :  { %3554 = vpow2.f32 %v2758_v57  ;;  %v1330_v2 = vrot.slane %v1307_v61, 2  ;;  %v1283_v7 = vpop.f32.mrf.mxu0  ;;  %v1296_v16 = vpop.f32.mrf.mxu1  ;;  %v1331_v56 = vrot.slane %v1320_v1, 2 }
 0x55f   :  { %v1338_v17 = vadd.f32 %v1330_v2, %v4095_v12  ;;  %v1339_v13 = vadd.f32 %v1331_v56, %v4101_v46 }
 0x561   :  { %v2759_v25 = vmul.f32 -1.442695, %v1338_v17 }
 0x562   :  { %v3553_v34 = vpop.eup %3552 }
 0x563   :  { %v3555_v39 = vpop.eup %3554  ;;  %v1349_v45 = vadd.f32 1.0, %v3553_v34  ;;  %3556 = vpow2.f32 %v2759_v25 }
 0x564   :  { %v1350_v50 = vadd.f32 1.0, %v3555_v39  ;;  %v1309_v38 = vpop.f32.mrf.mxu2  ;;  %v1322_v53 = vpop.f32.mrf.mxu3 }
 0x565   :  { %3558 = vrcp.f32 %v1349_v45  ;;  %v1363_v23 = vand.u32 2147483648, %v1349_v45  ;;  %v1361_v3 = vand.u32 2147483647, %v1349_v45  ;;  %vm1357_vm8 = vweird.f32 %v1349_v45 }
 0x566   :  { %3560 = vrcp.f32 %v1350_v50  ;;  %v1378_v49 = vand.u32 2147483648, %v1350_v50  ;;  %v1376_v44 = vand.u32 2147483647, %v1350_v50  ;;  %vm1372_vm9 = vweird.f32 %v1350_v50 }
 0x567   :  { %v1364_v5 = vor.u32 1.1754944e-38, %v1363_v23  ;;  %vm1362_vm12 = vcmp.eq.f32.partialorder %v1361_v3, 8.507059e+37 }
 0x568   :  { %v1379_v0 = vor.u32 1.1754944e-38, %v1378_v49  ;;  %vm1377_vm13 = vcmp.eq.f32.partialorder %v1376_v44, 8.507059e+37 }
 0x569   :  { %v3557_v4 = vpop.eup %3556 }
 0x56a   :  { %v1351_v8 = vadd.f32 1.0, %v3557_v4 }
 0x56b   :  { %v3559_v11 = vpop.eup %3558 }
 0x56c   :  { %v3561_v36 = vpop.eup %3560  ;;  %v1353_v58 = vmul.f32 %v3559_v11, %v1349_v45  ;;  %3562 = vrcp.f32 %v1351_v8  ;;  %vm1358_vm6 = vweird.f32 %v3559_v11  ;;  %v1393_v10 = vand.u32 2147483648, %v1351_v8 }
 0x56d   :  { %v1368_v12 = vmul.f32 %v3561_v36, %v1350_v50  ;;  %3564 = vtanh.f32 %v1339_v13  ;;  %vm1373_vm7 = vweird.f32 %v3561_v36  ;;  %vm1359_vm10 = vmor %vm1357_vm8, %vm1358_vm6  ;;  %vm1387_vm15 = vweird.f32 %v1351_v8 }
 0x56e   :  { %v1354_v59 = vsub.f32 1.0, %v1353_v58  ;;  %vm1374_vm11 = vmor %vm1372_vm9, %vm1373_vm7  ;;  %v1391_v6 = vand.u32 2147483647, %v1351_v8  ;;  %v1394_v18 = vor.u32 1.1754944e-38, %v1393_v10 }
 0x56f   :  { %v1369_v31 = vsub.f32 1.0, %v1368_v12 }
 0x570   :  { %v1355_v28 = vmul.f32 %v3559_v11, %v1354_v59  ;;  %vm1392_vm1 = vcmp.eq.f32.partialorder %v1391_v6, 8.507059e+37 }
 0x571   :  { %v1370_v40 = vmul.f32 %v3561_v36, %v1369_v31 }
 0x572   :  { %v3563_v60 = vpop.eup %3562  ;;  %v1356_v62 = vadd.f32 %v3559_v11, %v1355_v28 }
 0x573   :  { %v1383_v46 = vmul.f32 %v3563_v60, %v1351_v8  ;;  %v1371_v24 = vadd.f32 %v3561_v36, %v1370_v40  ;;  %v3565_v55 = vpop.eup %3564  ;;  %vm1388_vm14 = vweird.f32 %v3563_v60 }
 0x574   :  { %v1360_v9 = vsel %vm1359_vm10, %v3559_v11, %v1356_v62  ;;  %vm1389_vm0 = vmor %vm1387_vm15, %vm1388_vm14 }
 0x575   :  { %v1384_v19 = vsub.f32 1.0, %v1383_v46  ;;  %v1365_v48 = vsel %vm1362_vm12, %v1364_v5, %v1360_v9  ;;  %v1375_v63 = vsel %vm1374_vm11, %v3561_v36, %v1371_v24 }
 0x576   :  { %v1380_v29 = vsel %vm1377_vm13, %v1379_v0, %v1375_v63  ;;  %v1402_v54 = vmul.f32 %v3565_v55, %v1365_v48 }
 0x577   :  { %v1385_v21 = vmul.f32 %v3563_v60, %v1384_v19  ;;  %v1401_v35 = vmul.f32 %v1399_v20, %v1380_v29 }
 0x579   :  { %v1403_v41 = vadd.f32 %v1402_v54, %v1401_v35  ;;  %v1386_v32 = vadd.f32 %v3563_v60, %v1385_v21 }
 0x57b   :  { %3566 = vtanh.f32 %v1403_v41  ;;  %v1390_v15 = vsel %vm1389_vm0, %v3563_v60, %v1386_v32 }
 0x57c   :  { %v1395_v27 = vsel %vm1392_vm1, %v1394_v18, %v1390_v15 }
 0x581   :  { %v3567_v26 = vpop.eup %3566 }
 0x582   :  { %v1405_v30 = vmul.f32 %v3567_v26, %v1395_v27 }
 0x584   :  { %v4170_v33 = vadd.f32 %v1408_v22, %v1405_v30 }
 0x585   :  { %3667 = dma.done.wait [#allocation4], 8192 }
 0x586   :  { %3668 = vsyncadd [#allocation4], 4294959104 }
 0x587   :  { %3669 = dma.done.wait [#allocation4 + $0x1], 8192 }
 0x588   :  { %3670 = vsyncadd [#allocation4 + $0x1], 4294959104  ;;  %v2986_v37 = vld [vmem:[#allocation2 + $0x1c0] sm:$0xf]  ;;  %v2994_v43 = vld [vmem:[#allocation2 + $0x1c8] sm:$0xf] }
 0x589   :  { %v3366_v42 = vld [vmem:[#allocation2 + $0x1dc] sm:$0xf0]  ;;  %v3367_v51 = vld [vmem:[#allocation2 + $0x1e4] sm:$0xf0]  ;;  %v3363_v52 = vld [vmem:[#allocation2 + $0x1cc] sm:$0xf] }
 0x58a   :  { %v2987_v47 = vor.u32 %v3366_v42, %v2986_v37  ;;  %v2996_v57 = vld [vmem:[#allocation2 + $0x1e8] sm:$0xf0]  ;;  %v2995_v61 = vor.u32 %v3367_v51, %v2994_v43  ;;  %v3362_v2 = vld [vmem:[#allocation2 + $0x1c4] sm:$0xf]  ;;  %v2954_v16 = vld [vmem:[#allocation2 + $0x180] sm:$0xf] }
 0x58b   :  { %v2999_v1 = vor.u32 %v3363_v52, %v2996_v57  ;;  %v2988_v7 = vld [vmem:[#allocation2 + $0x1e0] sm:$0xf0]  ;;  %v3358_v25 = vld [vmem:[#allocation2 + $0x19c] sm:$0xf0]  ;;  %v2962_v34 = vld [vmem:[#allocation2 + $0x188] sm:$0xf] }
 0x58c   :  { %1825 = vmatpush.bf16.msra.mxu0 %v2987_v47  ;;  %v2991_v17 = vor.u32 %v3362_v2, %v2988_v7  ;;  %v3359_v39 = vld [vmem:[#allocation2 + $0x1a4] sm:$0xf0]  ;;  %1851 = vmatpush.bf16.msra.mxu2 %v2995_v61  ;;  %v2955_v45 = vor.u32 %v3358_v25, %v2954_v16  ;;  %v3355_v38 = vld [vmem:[#allocation2 + $0x18c] sm:$0xf]  ;;  %v3354_v56 = vld [vmem:[#allocation2 + $0x184] sm:$0xf] }
 0x58d   :  { %1864 = vmatpush.bf16.msra.mxu3 %v2999_v1  ;;  %v2963_v50 = vor.u32 %v3359_v39, %v2962_v34  ;;  %v2964_v53 = vld [vmem:[#allocation2 + $0x1a8] sm:$0xf0]  ;;  %v2956_v8 = vld [vmem:[#allocation2 + $0x1a0] sm:$0xf0]  ;;  %v2922_v11 = vld [vmem:[#allocation2 + $0x140] sm:$0xf] }
 0x58e   :  { %1838 = vmatpush.bf16.msra.mxu1 %v2991_v17  ;;  %v2967_v4 = vor.u32 %v3355_v38, %v2964_v53  ;;  %v3350_v13 = vld [vmem:[#allocation2 + $0x15c] sm:$0xf0]  ;;  %v2959_v36 = vor.u32 %v3354_v56, %v2956_v8  ;;  %v2930_v58 = vld [vmem:[#allocation2 + $0x148] sm:$0xf]  ;;  %v3347_v59 = vld [vmem:[#allocation2 + $0x14c] sm:$0xf] }
 0x58f   :  { %v3351_v12 = vld [vmem:[#allocation2 + $0x164] sm:$0xf0]  ;;  %v2923_v31 = vor.u32 %v3350_v13, %v2922_v11  ;;  %v2932_v23 = vld [vmem:[#allocation2 + $0x168] sm:$0xf0]  ;;  %v3346_v49 = vld [vmem:[#allocation2 + $0x144] sm:$0xf] }
 0x590   :  { %1826 = vmatpush.bf16.msra.mxu0 %v2955_v45  ;;  %v2924_v28 = vld [vmem:[#allocation2 + $0x160] sm:$0xf0]  ;;  %1852 = vmatpush.bf16.msra.mxu2 %v2963_v50  ;;  %v2931_v3 = vor.u32 %v3351_v12, %v2930_v58  ;;  %v2935_v40 = vor.u32 %v3347_v59, %v2932_v23  ;;  %v2890_v44 = vld [vmem:[#allocation2 + $0x100] sm:$0xf]  ;;  %v2898_v62 = vld [vmem:[#allocation2 + $0x108] sm:$0xf] }
 0x591   :  { %1865 = vmatpush.bf16.msra.mxu3 %v2967_v4  ;;  %v3342_v60 = vld [vmem:[#allocation2 + $0x11c] sm:$0xf0]  ;;  %v2927_v46 = vor.u32 %v3346_v49, %v2924_v28  ;;  %v3343_v5 = vld [vmem:[#allocation2 + $0x124] sm:$0xf0]  ;;  %v3339_v24 = vld [vmem:[#allocation2 + $0x10c] sm:$0xf] }
 0x592   :  { %1839 = vmatpush.bf16.msra.mxu1 %v2959_v36  ;;  %v2900_v20 = vld [vmem:[#allocation2 + $0x128] sm:$0xf0]  ;;  %v3338_v0 = vld [vmem:[#allocation2 + $0x104] sm:$0xf]  ;;  %v2891_v55 = vor.u32 %v3342_v60, %v2890_v44  ;;  %v2899_v19 = vor.u32 %v3343_v5, %v2898_v62  ;;  %v2858_v63 = vld [vmem:[#allocation2 + $0xc0] sm:$0xf]  ;;  %v1419_v60 = vpack.c.bf16 %v4170_v33, %v4170_v33 }
 0x593   :  { %v2892_v9 = vld [vmem:[#allocation2 + $0x120] sm:$0xf0]  ;;  %v2903_v48 = vor.u32 %v3339_v24, %v2900_v20  ;;  %v3334_v29 = vld [vmem:[#allocation2 + $0xdc] sm:$0xf0]  ;;  %v2866_v54 = vld [vmem:[#allocation2 + $0xc8] sm:$0xf] }
 0x594   :  { %1827 = vmatpush.bf16.msra.mxu0 %v2923_v31  ;;  %1853 = vmatpush.bf16.msra.mxu2 %v2931_v3  ;;  %v2895_v21 = vor.u32 %v3338_v0, %v2892_v9  ;;  %v3335_v35 = vld [vmem:[#allocation2 + $0xe4] sm:$0xf0]  ;;  %v3331_v41 = vld [vmem:[#allocation2 + $0xcc] sm:$0xf]  ;;  %v3330_v10 = vld [vmem:[#allocation2 + $0xc4] sm:$0xf]  ;;  %v2859_v14 = vor.u32 %v3334_v29, %v2858_v63 }
 0x595   :  { %1866 = vmatpush.bf16.msra.mxu3 %v2935_v40  ;;  %v2868_v32 = vld [vmem:[#allocation2 + $0xe8] sm:$0xf0]  ;;  %v2860_v6 = vld [vmem:[#allocation2 + $0xe0] sm:$0xf0]  ;;  %v2867_v15 = vor.u32 %v3335_v35, %v2866_v54  ;;  %v2826_v22 = vld [vmem:[#allocation2 + $0x80] sm:$0xf] }
 0x596   :  { %1840 = vmatpush.bf16.msra.mxu1 %v2927_v46  ;;  %v2871_v18 = vor.u32 %v3331_v41, %v2868_v32  ;;  %v3326_v26 = vld [vmem:[#allocation2 + $0x9c] sm:$0xf0]  ;;  %v2834_v27 = vld [vmem:[#allocation2 + $0x88] sm:$0xf]  ;;  %v2863_v30 = vor.u32 %v3330_v10, %v2860_v6  ;;  %v3323_v42 = vld [vmem:[#allocation2 + $0x8c] sm:$0xf] }
 0x597   :  { %v3327_v37 = vld [vmem:[#allocation2 + $0xa4] sm:$0xf0]  ;;  %v2836_v43 = vld [vmem:[#allocation2 + $0xa8] sm:$0xf0]  ;;  %v3322_v47 = vld [vmem:[#allocation2 + $0x84] sm:$0xf]  ;;  %v2827_v52 = vor.u32 %v3326_v26, %v2826_v22 }
 0x598   :  { %1828 = vmatpush.bf16.msra.mxu0 %v2891_v55  ;;  %1854 = vmatpush.bf16.msra.mxu2 %v2899_v19  ;;  %v2828_v51 = vld [vmem:[#allocation2 + $0xa0] sm:$0xf0]  ;;  %v2835_v57 = vor.u32 %v3327_v37, %v2834_v27  ;;  %v2839_v61 = vor.u32 %v3323_v42, %v2836_v43  ;;  %v2794_v1 = vld [vmem:[#allocation2 + $0x40] sm:$0xf]  ;;  %v2802_v7 = vld [vmem:[#allocation2 + $0x48] sm:$0xf] }
 0x599   :  { %1867 = vmatpush.bf16.msra.mxu3 %v2903_v48  ;;  %v3318_v2 = vld [vmem:[#allocation2 + $0x5c] sm:$0xf0]  ;;  %v2831_v16 = vor.u32 %v3322_v47, %v2828_v51  ;;  %v3319_v17 = vld [vmem:[#allocation2 + $0x64] sm:$0xf0]  ;;  %v3315_v25 = vld [vmem:[#allocation2 + $0x4c] sm:$0xf] }
 0x59a   :  { %1841 = vmatpush.bf16.msra.mxu1 %v2895_v21  ;;  %v2804_v34 = vld [vmem:[#allocation2 + $0x68] sm:$0xf0]  ;;  %v3314_v39 = vld [vmem:[#allocation2 + $0x44] sm:$0xf]  ;;  %v2795_v50 = vor.u32 %v3318_v2, %v2794_v1  ;;  %v2762_v38 = vld [vmem:[#allocation2] sm:$0xf]  ;;  %v2803_v56 = vor.u32 %v3319_v17, %v2802_v7 }
 0x59b   :  { %v2796_v45 = vld [vmem:[#allocation2 + $0x60] sm:$0xf0]  ;;  %v3310_v53 = vld [vmem:[#allocation2 + $0x1c] sm:$0xf0]  ;;  %v2807_v4 = vor.u32 %v3315_v25, %v2804_v34  ;;  %v2770_v8 = vld [vmem:[#allocation2 + $0x8] sm:$0xf] }
 0x59c   :  { %1829 = vmatpush.bf16.msra.mxu0 %v2859_v14  ;;  %1855 = vmatpush.bf16.msra.mxu2 %v2867_v15  ;;  %v3311_v11 = vld [vmem:[#allocation2 + $0x24] sm:$0xf0]  ;;  %v3307_v13 = vld [vmem:[#allocation2 + $0xc] sm:$0xf]  ;;  %v2799_v36 = vor.u32 %v3314_v39, %v2796_v45  ;;  %v3002_v12 = vld [vmem:[#allocation2 + $0x1d0] sm:$0xf]  ;;  %v2763_v28 = vor.u32 %v3310_v53, %v2762_v38 }
 0x59d   :  { %1868 = vmatpush.bf16.msra.mxu3 %v2871_v18  ;;  %v2772_v58 = vld [vmem:[#allocation2 + $0x28] sm:$0xf0]  ;;  %v3368_v59 = vld [vmem:[#allocation2 + $0x1ec] sm:$0xf0]  ;;  %v3010_v31 = vld [vmem:[#allocation2 + $0x1d8] sm:$0xf]  ;;  %v2771_v62 = vor.u32 %v3311_v11, %v2770_v8 }
 0x59e   :  { %1842 = vmatpush.bf16.msra.mxu1 %v2863_v30  ;;  %v3369_v23 = vld [vmem:[#allocation2 + $0x1f4] sm:$0xf0]  ;;  %v3365_v49 = vld [vmem:[#allocation2 + $0x1dc] sm:$0xf]  ;;  %v3306_v40 = vld [vmem:[#allocation2 + $0x4] sm:$0xf]  ;;  %v2775_v46 = vor.u32 %v3307_v13, %v2772_v58  ;;  %v3003_v20 = vor.u32 %v3368_v59, %v3002_v12 }
 0x59f   :  { %v3012_v3 = vld [vmem:[#allocation2 + $0x1f8] sm:$0xf0]  ;;  %v2764_v44 = vld [vmem:[#allocation2 + $0x20] sm:$0xf0]  ;;  %v3364_v5 = vld [vmem:[#allocation2 + $0x1d4] sm:$0xf]  ;;  %v3011_v0 = vor.u32 %v3369_v23, %v3010_v31 }
 0x5a0   :  { %1830 = vmatpush.bf16.msra.mxu0 %v2827_v52  ;;  %1856 = vmatpush.bf16.msra.mxu2 %v2835_v57  ;;  %v3004_v24 = vld [vmem:[#allocation2 + $0x1f0] sm:$0xf0]  ;;  %v2970_v9 = vld [vmem:[#allocation2 + $0x190] sm:$0xf]  ;;  %v3015_v55 = vor.u32 %v3365_v49, %v3012_v3  ;;  %v2767_v19 = vor.u32 %v3306_v40, %v2764_v44  ;;  %v2978_v63 = vld [vmem:[#allocation2 + $0x198] sm:$0xf] }
 0x5a1   :  { %1869 = vmatpush.bf16.msra.mxu3 %v2839_v61  ;;  %v3360_v48 = vld [vmem:[#allocation2 + $0x1ac] sm:$0xf0]  ;;  %v3361_v29 = vld [vmem:[#allocation2 + $0x1b4] sm:$0xf0]  ;;  %v3007_v54 = vor.u32 %v3364_v5, %v3004_v24  ;;  %v3357_v21 = vld [vmem:[#allocation2 + $0x19c] sm:$0xf] }
 0x5a2   :  { %1843 = vmatpush.bf16.msra.mxu1 %v2831_v16  ;;  %v2980_v35 = vld [vmem:[#allocation2 + $0x1b8] sm:$0xf0]  ;;  %v4174_v33 = vrot.slane %v1419_v60, 3  ;;  %v3356_v41 = vld [vmem:[#allocation2 + $0x194] sm:$0xf]  ;;  %v2971_v10 = vor.u32 %v3360_v48, %v2970_v9  ;;  %v2979_v6 = vor.u32 %v3361_v29, %v2978_v63  ;;  %s3678_s13 = smov [#allocation8]  }
 0x5a3   :  { %v2972_v32 = vld [vmem:[#allocation2 + $0x1b0] sm:$0xf0]  ;;  %v2938_v14 = vld [vmem:[#allocation2 + $0x150] sm:$0xf]  ;;  %v2983_v15 = vor.u32 %v3357_v21, %v2980_v35  ;;  %v2946_v22 = vld [vmem:[#allocation2 + $0x158] sm:$0xf] }
 0x5a4   :  { %1831 = vmatpush.bf16.msra.mxu0 %v2795_v50  ;;  %1857 = vmatpush.bf16.msra.mxu2 %v2803_v56  ;;  %v3352_v18 = vld [vmem:[#allocation2 + $0x16c] sm:$0xf0]  ;;  %v3353_v26 = vld [vmem:[#allocation2 + $0x174] sm:$0xf0]  ;;  %v2975_v27 = vor.u32 %v3356_v41, %v2972_v32  ;;  %v3349_v30 = vld [vmem:[#allocation2 + $0x15c] sm:$0xf] }
 0x5a5   :  { %1870 = vmatpush.bf16.msra.mxu3 %v2807_v4  ;;  %v2948_v37 = vld [vmem:[#allocation2 + $0x178] sm:$0xf0]  ;;  %v3348_v42 = vld [vmem:[#allocation2 + $0x154] sm:$0xf]  ;;  %v2939_v47 = vor.u32 %v3352_v18, %v2938_v14  ;;  %v2947_v51 = vor.u32 %v3353_v26, %v2946_v22  ;;  %v2906_v52 = vld [vmem:[#allocation2 + $0x110] sm:$0xf] }
 0x5a6   :  { %1844 = vmatpush.bf16.msra.mxu1 %v2799_v36  ;;  %v2940_v43 = vld [vmem:[#allocation2 + $0x170] sm:$0xf0]  ;;  %v2951_v57 = vor.u32 %v3349_v30, %v2948_v37  ;;  %v3344_v61 = vld [vmem:[#allocation2 + $0x12c] sm:$0xf0]  ;;  %v2914_v1 = vld [vmem:[#allocation2 + $0x118] sm:$0xf] }
 0x5a7   :  { %v3345_v2 = vld [vmem:[#allocation2 + $0x134] sm:$0xf0]  ;;  %v2943_v7 = vor.u32 %v3348_v42, %v2940_v43  ;;  %v3341_v16 = vld [vmem:[#allocation2 + $0x11c] sm:$0xf]  ;;  %v3340_v25 = vld [vmem:[#allocation2 + $0x114] sm:$0xf]  ;;  %v2907_v39 = vor.u32 %v3344_v61, %v2906_v52 }
 0x5a8   :  { %1832 = vmatpush.bf16.msra.mxu0 %v2763_v28  ;;  %1858 = vmatpush.bf16.msra.mxu2 %v2771_v62  ;;  %v2916_v17 = vld [vmem:[#allocation2 + $0x138] sm:$0xf0]  ;;  %v2908_v34 = vld [vmem:[#allocation2 + $0x130] sm:$0xf0]  ;;  %v2915_v45 = vor.u32 %v3345_v2, %v2914_v1  ;;  %v2874_v50 = vld [vmem:[#allocation2 + $0xd0] sm:$0xf] }
 0x5a9   :  { %1871 = vmatpush.bf16.msra.mxu3 %v2775_v46  ;;  %v2919_v38 = vor.u32 %v3341_v16, %v2916_v17  ;;  %v3336_v53 = vld [vmem:[#allocation2 + $0xec] sm:$0xf0]  ;;  %v2882_v56 = vld [vmem:[#allocation2 + $0xd8] sm:$0xf]  ;;  %v2911_v8 = vor.u32 %v3340_v25, %v2908_v34  ;;  %v3333_v11 = vld [vmem:[#allocation2 + $0xdc] sm:$0xf] }
 0x5aa   :  { %1845 = vmatpush.bf16.msra.mxu1 %v2767_v19  ;;  %v3337_v4 = vld [vmem:[#allocation2 + $0xf4] sm:$0xf0]  ;;  %v2884_v13 = vld [vmem:[#allocation2 + $0xf8] sm:$0xf0]  ;;  %v3332_v36 = vld [vmem:[#allocation2 + $0xd4] sm:$0xf]  ;;  %v2875_v12 = vor.u32 %v3336_v53, %v2874_v50 }
 0x5ab   :  { %1859 = vmatmul.bf16.vlgmr.msra.gmra.mxu2 %v4174_v33  ;;  %1833 = vmatmul.bf16.vlgmr.msra.gmra.mxu0 %v4174_v33  ;;  %v2876_v58 = vld [vmem:[#allocation2 + $0xf0] sm:$0xf0]  ;;  %v2883_v59 = vor.u32 %v3337_v4, %v2882_v56  ;;  %v2842_v31 = vld [vmem:[#allocation2 + $0x90] sm:$0xf]  ;;  %v2887_v23 = vor.u32 %v3333_v11, %v2884_v13  ;;  %v2850_v28 = vld [vmem:[#allocation2 + $0x98] sm:$0xf] }
 0x5ac   :  { %1877 = vmatpush.bf16.msrb.mxu0 %v3003_v20  ;;  %1903 = vmatpush.bf16.msrb.mxu2 %v3011_v0  ;;  %v3328_v49 = vld [vmem:[#allocation2 + $0xac] sm:$0xf0]  ;;  %v3329_v3 = vld [vmem:[#allocation2 + $0xb4] sm:$0xf0]  ;;  %v2879_v40 = vor.u32 %v3332_v36, %v2876_v58  ;;  %v3325_v44 = vld [vmem:[#allocation2 + $0x9c] sm:$0xf] }
 0x5ad   :  { %1916 = vmatpush.bf16.msrb.mxu3 %v3015_v55  ;;  %1846 = vmatmul.bf16.vlgmr.msra.gmra.mxu1 %v4174_v33  ;;  %v2852_v60 = vld [vmem:[#allocation2 + $0xb8] sm:$0xf0]  ;;  %v3324_v62 = vld [vmem:[#allocation2 + $0x94] sm:$0xf]  ;;  %v2843_v5 = vor.u32 %v3328_v49, %v2842_v31  ;;  %v2851_v24 = vor.u32 %v3329_v3, %v2850_v28  ;;  %v2810_v20 = vld [vmem:[#allocation2 + $0x50] sm:$0xf] }
 0x5ae   :  { %1890 = vmatpush.bf16.msrb.mxu1 %v3007_v54  ;;  %1872 = vmatmul.bf16.vlgmr.msra.gmra.mxu3 %v4174_v33  ;;  %v2844_v46 = vld [vmem:[#allocation2 + $0xb0] sm:$0xf0]  ;;  %v2855_v0 = vor.u32 %v3325_v44, %v2852_v60  ;;  %v3320_v9 = vld [vmem:[#allocation2 + $0x6c] sm:$0xf0]  ;;  %v2818_v55 = vld [vmem:[#allocation2 + $0x58] sm:$0xf] }
 0x5af   :  { %v3321_v19 = vld [vmem:[#allocation2 + $0x74] sm:$0xf0]  ;;  %v2847_v48 = vor.u32 %v3324_v62, %v2844_v46  ;;  %v3317_v63 = vld [vmem:[#allocation2 + $0x5c] sm:$0xf]  ;;  %v3316_v54 = vld [vmem:[#allocation2 + $0x54] sm:$0xf]  ;;  %v2811_v35 = vor.u32 %v3320_v9, %v2810_v20 }
 0x5b0   :  { %1878 = vmatpush.bf16.msrb.mxu0 %v2971_v10  ;;  %1904 = vmatpush.bf16.msrb.mxu2 %v2979_v6  ;;  %v2820_v29 = vld [vmem:[#allocation2 + $0x78] sm:$0xf0]  ;;  %v2812_v21 = vld [vmem:[#allocation2 + $0x70] sm:$0xf0]  ;;  %v2819_v41 = vor.u32 %v3321_v19, %v2818_v55  ;;  %v2778_v32 = vld [vmem:[#allocation2 + $0x10] sm:$0xf] }
 0x5b1   :  { %1917 = vmatpush.bf16.msrb.mxu3 %v2983_v15  ;;  %v2823_v10 = vor.u32 %v3317_v63, %v2820_v29  ;;  %v3312_v6 = vld [vmem:[#allocation2 + $0x2c] sm:$0xf0]  ;;  %v2786_v14 = vld [vmem:[#allocation2 + $0x18] sm:$0xf]  ;;  %v2815_v18 = vor.u32 %v3316_v54, %v2812_v21  ;;  %v3309_v22 = vld [vmem:[#allocation2 + $0x1c] sm:$0xf] }
 0x5b2   :  { %1891 = vmatpush.bf16.msrb.mxu1 %v2975_v27  ;;  %v3313_v15 = vld [vmem:[#allocation2 + $0x34] sm:$0xf0]  ;;  %v2788_v26 = vld [vmem:[#allocation2 + $0x38] sm:$0xf0]  ;;  %v3308_v27 = vld [vmem:[#allocation2 + $0x14] sm:$0xf]  ;;  %v2779_v37 = vor.u32 %v3312_v6, %v2778_v32 }
 0x5b3   :  { %v2780_v30 = vld [vmem:[#allocation2 + $0x30] sm:$0xf0]  ;;  %v2787_v42 = vor.u32 %v3313_v15, %v2786_v14  ;;  %v2791_v43 = vor.u32 %v3309_v22, %v2788_v26  ;;  %v3393_v52 = vld [vmem:[#allocation3 + $0xb8] sm:$0xff]  ;;  %v3375_v16 = vld [vmem:[#allocation3 + $0x28] sm:$0xff]  ;;  %s2571_s14 = sshll.u32 %s3678_s13, 4  ;;  %s2573_s17 = sshll.u32 %s4212_s9, 4  ;;  %s2572_s14 = int_to_ptr.vmem [resolvable:$true] %s2571_s14  ;;  %s2574_s17 = int_to_ptr.hbm [resolvable:$true] %s2573_s17 }
 0x5b4   :  { %1879 = vmatpush.bf16.msrb.mxu0 %v2939_v47  ;;  %1905 = vmatpush.bf16.msrb.mxu2 %v2947_v51  ;;  %v3377_v47 = vld [vmem:[#allocation3 + $0x38] sm:$0xff]  ;;  %v2783_v51 = vor.u32 %v3308_v27, %v2780_v30  ;;  %v3376_v61 = vld [vmem:[#allocation3 + $0x30] sm:$0xff]  ;;  %v3391_v25 = vld [vmem:[#allocation3 + $0xa8] sm:$0xff] }
 0x5b5   :  { %1918 = vmatpush.bf16.msrb.mxu3 %v2951_v57  ;;  %v3385_v57 = vld [vmem:[#allocation3 + $0x78] sm:$0xff]  ;;  %v3392_v2 = vld [vmem:[#allocation3 + $0xb0] sm:$0xff]  ;;  %v3383_v34 = vld [vmem:[#allocation3 + $0x68] sm:$0xff] }
 0x5b6   :  { %1892 = vmatpush.bf16.msrb.mxu1 %v2943_v7  ;;  %v3401_v1 = vld [vmem:[#allocation3 + $0xf8] sm:$0xff]  ;;  %v3384_v7 = vld [vmem:[#allocation3 + $0x70] sm:$0xff]  ;;  %v3390_v50 = vld [vmem:[#allocation3 + $0xa0] sm:$0xff] }
 0x5b7   :  { %v3400_v17 = vld [vmem:[#allocation3 + $0xf0] sm:$0xff]  ;;  %v3373_v53 = vld [vmem:[#allocation3 + $0x18] sm:$0xff]  ;;  %v3371_v58 = vld [vmem:[#allocation3 + $0x8] sm:$0xff] }
 0x5b8   :  { %1880 = vmatpush.bf16.msrb.mxu0 %v2907_v39  ;;  %1906 = vmatpush.bf16.msrb.mxu2 %v2915_v45  ;;  %v3374_v39 = vld [vmem:[#allocation3 + $0x20] sm:$0xff]  ;;  %v3399_v45 = vld [vmem:[#allocation3 + $0xe8] sm:$0xff]  ;;  %v3389_v56 = vld [vmem:[#allocation3 + $0x98] sm:$0xff] }
 0x5b9   :  { %1919 = vmatpush.bf16.msrb.mxu3 %v2919_v38  ;;  %v3382_v38 = vld [vmem:[#allocation3 + $0x60] sm:$0xff]  ;;  %v3381_v4 = vld [vmem:[#allocation3 + $0x58] sm:$0xff]  ;;  %v3388_v13 = vld [vmem:[#allocation3 + $0x90] sm:$0xff] }
 0x5ba   :  { %1893 = vmatpush.bf16.msrb.mxu1 %v2911_v8  ;;  %v3372_v8 = vld [vmem:[#allocation3 + $0x10] sm:$0xff]  ;;  %v3397_v11 = vld [vmem:[#allocation3 + $0xd8] sm:$0xff]  ;;  %v3379_v31 = vld [vmem:[#allocation3 + $0x48] sm:$0xff] }
 0x5bb   :  { %v3380_v36 = vld [vmem:[#allocation3 + $0x50] sm:$0xff]  ;;  %v3409_v49 = vld [vmem:[#allocation3 + $0x138] sm:$0xff]  ;;  %v3395_v28 = vld [vmem:[#allocation3 + $0xc8] sm:$0xff] }
 0x5bc   :  { %1881 = vmatpush.bf16.msrb.mxu0 %v2875_v12  ;;  %1907 = vmatpush.bf16.msrb.mxu2 %v2883_v59  ;;  %v3396_v12 = vld [vmem:[#allocation3 + $0xd0] sm:$0xff]  ;;  %v3387_v59 = vld [vmem:[#allocation3 + $0x88] sm:$0xff]  ;;  %v3386_v3 = vld [vmem:[#allocation3 + $0x80] sm:$0xff] }
 0x5bd   :  { %1920 = vmatpush.bf16.msrb.mxu3 %v2887_v23  ;;  %v3370_v23 = vld [vmem:[#allocation3] sm:$0xff]  ;;  %v3417_v44 = vld [vmem:[#allocation3 + $0x178] sm:$0xff]  ;;  %v3408_v60 = vld [vmem:[#allocation3 + $0x130] sm:$0xff] }
 0x5be   :  { %1894 = vmatpush.bf16.msrb.mxu1 %v2879_v40  ;;  %v3378_v40 = vld [vmem:[#allocation3 + $0x40] sm:$0xff]  ;;  %v3416_v46 = vld [vmem:[#allocation3 + $0x170] sm:$0xff]  ;;  %v3407_v20 = vld [vmem:[#allocation3 + $0x128] sm:$0xff] }
 0x5bf   :  { %v3394_v62 = vld [vmem:[#allocation3 + $0xc0] sm:$0xff]  ;;  %v3424_v9 = vld [vmem:[#allocation3 + $0x1b0] sm:$0xff]  ;;  %v3423_v63 = vld [vmem:[#allocation3 + $0x1a8] sm:$0xff] }
 0x5c0   :  { %1882 = vmatpush.bf16.msrb.mxu0 %v2843_v5  ;;  %1908 = vmatpush.bf16.msrb.mxu2 %v2851_v24  ;;  %v3425_v5 = vld [vmem:[#allocation3 + $0x1b8] sm:$0xff]  ;;  %v3432_v55 = vld [vmem:[#allocation3 + $0x1f0] sm:$0xff]  ;;  %v3406_v19 = vld [vmem:[#allocation3 + $0x120] sm:$0xff] }
 0x5c1   :  { %1921 = vmatpush.bf16.msrb.mxu3 %v2855_v0  ;;  %v3433_v24 = vld [vmem:[#allocation3 + $0x1f8] sm:$0xff]  ;;  %v3415_v0 = vld [vmem:[#allocation3 + $0x168] sm:$0xff]  ;;  %v3404_v32 = vld [vmem:[#allocation3 + $0x110] sm:$0xff] }
 0x5c2   :  { %1895 = vmatpush.bf16.msrb.mxu1 %v2847_v48  ;;  %v3414_v48 = vld [vmem:[#allocation3 + $0x160] sm:$0xff]  ;;  %v3431_v29 = vld [vmem:[#allocation3 + $0x1e8] sm:$0xff]  ;;  %v3405_v54 = vld [vmem:[#allocation3 + $0x118] sm:$0xff] }
 0x5c3   :  { %v3413_v21 = vld [vmem:[#allocation3 + $0x158] sm:$0xff]  ;;  %v3403_v15 = vld [vmem:[#allocation3 + $0x108] sm:$0xff]  ;;  %v3420_v27 = vld [vmem:[#allocation3 + $0x190] sm:$0xff] }
 0x5c4   :  { %1883 = vmatpush.bf16.msrb.mxu0 %v2811_v35  ;;  %1909 = vmatpush.bf16.msrb.mxu2 %v2819_v41  ;;  %v3422_v35 = vld [vmem:[#allocation3 + $0x1a0] sm:$0xff]  ;;  %v3421_v6 = vld [vmem:[#allocation3 + $0x198] sm:$0xff]  ;;  %v3411_v26 = vld [vmem:[#allocation3 + $0x148] sm:$0xff] }
 0x5c5   :  { %1922 = vmatpush.bf16.msrb.mxu3 %v2823_v10  ;;  %v3430_v41 = vld [vmem:[#allocation3 + $0x1e0] sm:$0xff]  ;;  %v3412_v10 = vld [vmem:[#allocation3 + $0x150] sm:$0xff]  ;;  %v3429_v14 = vld [vmem:[#allocation3 + $0x1d8] sm:$0xff] }
 0x5c6   :  { %1896 = vmatpush.bf16.msrb.mxu1 %v2815_v18  ;;  %v4187_v18 = vld [vmem:[%s4209_s6] sm:$0xff]  ;;  %v3428_v30 = vld [vmem:[#allocation3 + $0x1d0] sm:$0xff] }
 0x5c7   :  { %v1486_v22 = vperm.slane %v4187_v18, 0 }
 0x5c8   :  { %1884 = vmatpush.bf16.msrb.mxu0 %v2779_v37  ;;  %1910 = vmatpush.bf16.msrb.mxu2 %v2787_v42  ;;  %v1487_v37 = vperm.slane %v4187_v18, 1  ;;  %v3402_v42 = vld [vmem:[#allocation3 + $0x100] sm:$0xff] }
 0x5c9   :  { %1923 = vmatpush.bf16.msrb.mxu3 %v2791_v43 }
 0x5ca   :  { %1897 = vmatpush.bf16.msrb.mxu1 %v2783_v51  ;;  %v3410_v51 = vld [vmem:[#allocation3 + $0x140] sm:$0xff] }
 0x5cb   :  { %1885 = vmatmul.bf16.vlgmr.msrb.gmra.mxu0 %v4174_v33  ;;  %1911 = vmatmul.bf16.vlgmr.msrb.gmra.mxu2 %v4174_v33 }
 0x5cc   :  { %2461 = vmatpush.bf16.msra.mxu0 %v3377_v47  ;;  %2487 = vmatpush.bf16.msra.mxu2 %v3393_v52  ;;  %v3419_v52 = vld [vmem:[#allocation3 + $0x188] sm:$0xff] }
 0x5cd   :  { %1924 = vmatmul.bf16.vlgmr.msrb.gmra.mxu3 %v4174_v33  ;;  %1898 = vmatmul.bf16.vlgmr.msrb.gmra.mxu1 %v4174_v33  ;;  %v3398_v33 = vld [vmem:[#allocation3 + $0xe0] sm:$0xff] }
 0x5ce   :  { %2474 = vmatpush.bf16.msra.mxu1 %v3385_v57  ;;  %2500 = vmatpush.bf16.msra.mxu3 %v3401_v1  ;;  %v3427_v57 = vld [vmem:[#allocation3 + $0x1c8] sm:$0xff] }
 0x5d0   :  { %2462 = vmatpush.bf16.msra.mxu0 %v3376_v61  ;;  %2488 = vmatpush.bf16.msra.mxu2 %v3392_v2  ;;  %v1488_v61 = vperm.slane %v4187_v18, 2  ;;  %v1489_v2 = vperm.slane %v4187_v18, 3 }
 0x5d2   :  { %2475 = vmatpush.bf16.msra.mxu1 %v3384_v7  ;;  %2501 = vmatpush.bf16.msra.mxu3 %v3400_v17 }
 0x5d4   :  { %2463 = vmatpush.bf16.msra.mxu0 %v3375_v16  ;;  %2489 = vmatpush.bf16.msra.mxu2 %v3391_v25 }
 0x5d6   :  { %2476 = vmatpush.bf16.msra.mxu1 %v3383_v34  ;;  %2502 = vmatpush.bf16.msra.mxu3 %v3399_v45  ;;  %v3426_v45 = vld [vmem:[#allocation3 + $0x1c0] sm:$0xff] }
 0x5d8   :  { %2464 = vmatpush.bf16.msra.mxu0 %v3374_v39  ;;  %2490 = vmatpush.bf16.msra.mxu2 %v3390_v50  ;;  %v3418_v39 = vld [vmem:[#allocation3 + $0x180] sm:$0xff] }
 0x5da   :  { %2477 = vmatpush.bf16.msra.mxu1 %v3382_v38  ;;  %2503 = vmatpush.bf16.msra.mxu3 %v3398_v33 }
 0x5dc   :  { %2465 = vmatpush.bf16.msra.mxu0 %v3373_v53  ;;  %2491 = vmatpush.bf16.msra.mxu2 %v3389_v56 }
 0x5de   :  { %2478 = vmatpush.bf16.msra.mxu1 %v3381_v4  ;;  %2504 = vmatpush.bf16.msra.mxu3 %v3397_v11 }
 0x5e0   :  { %2466 = vmatpush.bf16.msra.mxu0 %v3372_v8  ;;  %2492 = vmatpush.bf16.msra.mxu2 %v3388_v13 }
 0x5e2   :  { %2479 = vmatpush.bf16.msra.mxu1 %v3380_v36  ;;  %2505 = vmatpush.bf16.msra.mxu3 %v3396_v12 }
 0x5e4   :  { %2467 = vmatpush.bf16.msra.mxu0 %v3371_v58  ;;  %2493 = vmatpush.bf16.msra.mxu2 %v3387_v59  ;;  %v1490_v59 = vperm.slane %v4187_v18, 4 }
 0x5e6   :  { %2480 = vmatpush.bf16.msra.mxu1 %v3379_v31  ;;  %2506 = vmatpush.bf16.msra.mxu3 %v3395_v28  ;;  %v1491_v31 = vperm.slane %v4187_v18, 5 }
 0x5e8   :  { %2468 = vmatpush.bf16.msra.mxu0 %v3370_v23  ;;  %2494 = vmatpush.bf16.msra.mxu2 %v3386_v3 }
 0x5ea   :  { %2481 = vmatpush.bf16.msra.mxu1 %v3378_v40  ;;  %2507 = vmatpush.bf16.msra.mxu3 %v3394_v62 }
 0x5ec   :  { %2513 = vmatpush.bf16.msrb.mxu0 %v3409_v49  ;;  %2539 = vmatpush.bf16.msrb.mxu2 %v3425_v5 }
 0x5ee   :  { %2526 = vmatpush.bf16.msrb.mxu1 %v3417_v44  ;;  %2552 = vmatpush.bf16.msrb.mxu3 %v3433_v24  ;;  %v1492_v44 = vperm.slane %v4187_v18, 6 }
 0x5f0   :  { %2514 = vmatpush.bf16.msrb.mxu0 %v3408_v60  ;;  %2540 = vmatpush.bf16.msrb.mxu2 %v3424_v9  ;;  %v1493_v60 = vperm.slane %v4187_v18, 7  ;;  %v3568_v18 = vld [vmem:[%s4211_s8] ss:$0 sm:$0xff] }
 0x5f2   :  { %2527 = vmatpush.bf16.msrb.mxu1 %v3416_v46  ;;  %2553 = vmatpush.bf16.msrb.mxu3 %v3432_v55 }
 0x5f4   :  { %2515 = vmatpush.bf16.msrb.mxu0 %v3407_v20  ;;  %2541 = vmatpush.bf16.msrb.mxu2 %v3423_v63 }
 0x5f6   :  { %2528 = vmatpush.bf16.msrb.mxu1 %v3415_v0  ;;  %2554 = vmatpush.bf16.msrb.mxu3 %v3431_v29 }
 0x5f8   :  { %2516 = vmatpush.bf16.msrb.mxu0 %v3406_v19  ;;  %2542 = vmatpush.bf16.msrb.mxu2 %v3422_v35 }
 0x5fa   :  { %2529 = vmatpush.bf16.msrb.mxu1 %v3414_v48  ;;  %2555 = vmatpush.bf16.msrb.mxu3 %v3430_v41 }
 0x5fc   :  { %2517 = vmatpush.bf16.msrb.mxu0 %v3405_v54  ;;  %2543 = vmatpush.bf16.msrb.mxu2 %v3421_v6 }
 0x5fe   :  { %2530 = vmatpush.bf16.msrb.mxu1 %v3413_v21  ;;  %2556 = vmatpush.bf16.msrb.mxu3 %v3429_v14 }
 0x600   :  { %2518 = vmatpush.bf16.msrb.mxu0 %v3404_v32  ;;  %2544 = vmatpush.bf16.msrb.mxu2 %v3420_v27 }
 0x602   :  { %2531 = vmatpush.bf16.msrb.mxu1 %v3412_v10  ;;  %2557 = vmatpush.bf16.msrb.mxu3 %v3428_v30 }
 0x604   :  { %2519 = vmatpush.bf16.msrb.mxu0 %v3403_v15  ;;  %2545 = vmatpush.bf16.msrb.mxu2 %v3419_v52 }
 0x606   :  { %2532 = vmatpush.bf16.msrb.mxu1 %v3411_v26  ;;  %2558 = vmatpush.bf16.msrb.mxu3 %v3427_v57 }
 0x608   :  { %2520 = vmatpush.bf16.msrb.mxu0 %v3402_v42  ;;  %2546 = vmatpush.bf16.msrb.mxu2 %v3418_v39 }
 0x60a   :  { %2533 = vmatpush.bf16.msrb.mxu1 %v3410_v51  ;;  %2559 = vmatpush.bf16.msrb.mxu3 %v3426_v45 }
 0x628   :  { %v1834_v43 = vpop.f32.mrf.mxu0 }
 0x629   :  { %v1835_v47 = vadd.f32 %v1834_v43, %v1486_v22 }
 0x62a   :  { %v1847_v1 = vpop.f32.mrf.mxu1 }
 0x62b   :  { %v1929_v7 = vmax.f32 %v1835_v47, 0.0  ;;  %v1848_v16 = vadd.f32 %v1847_v1, %v1487_v37 }
 0x62d   :  { %v1937_v25 = vpack.c.bf16 %v1929_v7, %v1929_v7  ;;  %v1930_v34 = vmax.f32 %v1848_v16, 0.0 }
 0x62e   :  { %v1860_v17 = vpop.f32.mrf.mxu2 }
 0x62f   :  { %v1861_v50 = vadd.f32 %v1860_v17, %v1488_v61  ;;  %v1938_v33 = vpack.c.bf16 %v1930_v34, %v1930_v34  ;;  %2469 = vmatmul.bf16.vlgmr.msra.gmra.mxu0 %v1937_v25 }
 0x630   :  { %v1836_v4 = vpop.f32.mrf.mxu0 }
 0x631   :  { %v1873_v38 = vpop.f32.mrf.mxu3  ;;  %v1931_v56 = vmax.f32 %v1861_v50, 0.0  ;;  %2482 = vmatmul.bf16.vlgmr.msra.gmra.mxu1 %v1938_v33 }
 0x632   :  { %v1874_v53 = vadd.f32 %v1873_v38, %v1489_v2  ;;  %v1849_v13 = vpop.f32.mrf.mxu1 }
 0x633   :  { %v1939_v11 = vpack.c.bf16 %v1931_v56, %v1931_v56 }
 0x634   :  { %v1932_v8 = vmax.f32 %v1874_v53, 0.0 }
 0x635   :  { %2495 = vmatmul.bf16.vlgmr.msra.gmra.mxu2 %v1939_v11 }
 0x636   :  { %v1940_v36 = vpack.c.bf16 %v1932_v8, %v1932_v8  ;;  %v1862_v58 = vpop.f32.mrf.mxu2 }
 0x638   :  { %2508 = vmatmul.bf16.vlgmr.msra.gmra.mxu3 %v1940_v36 }
 0x639   :  { %v1875_v12 = vpop.f32.mrf.mxu3 }
 0x648   :  { %v1886_v23 = vpop.f32.mrf.mxu0 }
 0x649   :  { %v1887_v49 = vadd.f32 %v1886_v23, %v1490_v59 }
 0x64a   :  { %v1899_v28 = vpop.f32.mrf.mxu1 }
 0x64b   :  { %v1933_v3 = vmax.f32 %v1887_v49, 0.0  ;;  %v1900_v40 = vadd.f32 %v1899_v28, %v1491_v31 }
 0x64d   :  { %v1941_v62 = vpack.c.bf16 %v1933_v3, %v1933_v3  ;;  %v1934_v46 = vmax.f32 %v1900_v40, 0.0 }
 0x64e   :  { %v1912_v5 = vpop.f32.mrf.mxu2 }
 0x64f   :  { %v1942_v24 = vpack.c.bf16 %v1934_v46, %v1934_v46  ;;  %v1913_v20 = vadd.f32 %v1912_v5, %v1492_v44  ;;  %2521 = vmatmul.bf16.vlgmr.msrb.gmra.mxu0 %v1941_v62 }
 0x650   :  { %v1925_v0 = vpop.f32.mrf.mxu3  ;;  %v1888_v55 = vpop.f32.mrf.mxu0 }
 0x651   :  { %v1926_v9 = vadd.f32 %v1925_v0, %v1493_v60  ;;  %v1935_v19 = vmax.f32 %v1913_v20, 0.0  ;;  %2534 = vmatmul.bf16.vlgmr.msrb.gmra.mxu1 %v1942_v24 }
 0x652   :  { %v1901_v63 = vpop.f32.mrf.mxu1 }
 0x653   :  { %v1936_v48 = vmax.f32 %v1926_v9, 0.0  ;;  %v1943_v29 = vpack.c.bf16 %v1935_v19, %v1935_v19 }
 0x655   :  { %v1944_v54 = vpack.c.bf16 %v1936_v48, %v1936_v48  ;;  %2547 = vmatmul.bf16.vlgmr.msrb.gmra.mxu2 %v1943_v29 }
 0x656   :  { %v1914_v21 = vpop.f32.mrf.mxu2 }
 0x657   :  { %2560 = vmatmul.bf16.vlgmr.msrb.gmra.mxu3 %v1944_v54 }
 0x658   :  { %v1927_v35 = vpop.f32.mrf.mxu3 }
 0x6ac   :  { %v2470_v41 = vpop.f32.mrf.mxu0 }
 0x6ad   :  { %v2471_v27 = vadd.f32 %v3568_v18, %v2470_v41 }
 0x6ae   :  { %v2483_v32 = vpop.f32.mrf.mxu1 }
 0x6af   :  { %v2484_v30 = vadd.f32 %v2483_v32, %v2471_v27 }
 0x6b4   :  { %v2472_v10 = vpop.f32.mrf.mxu0 }
 0x6b6   :  { %v2485_v6 = vpop.f32.mrf.mxu1 }
 0x6b8   :  { %v2496_v14 = vpop.f32.mrf.mxu2 }
 0x6b9   :  { %v2497_v42 = vadd.f32 %v2496_v14, %v2484_v30 }
 0x6bb   :  { %v2509_v15 = vpop.f32.mrf.mxu3 }
 0x6bc   :  { %v2510_v47 = vadd.f32 %v2509_v15, %v2497_v42 }
 0x6c0   :  { %v2498_v22 = vpop.f32.mrf.mxu2 }
 0x6c3   :  { %v2511_v26 = vpop.f32.mrf.mxu3 }
 0x6cc   :  { %v2522_v37 = vpop.f32.mrf.mxu0 }
 0x6cd   :  { %v2523_v51 = vadd.f32 %v2522_v37, %v2510_v47 }
 0x6ce   :  { %v2535_v43 = vpop.f32.mrf.mxu1 }
 0x6cf   :  { %v2536_v61 = vadd.f32 %v2535_v43, %v2523_v51 }
 0x6d4   :  { %v2524_v52 = vpop.f32.mrf.mxu0 }
 0x6d6   :  { %v2537_v57 = vpop.f32.mrf.mxu1 }
 0x6d8   :  { %v2548_v1 = vpop.f32.mrf.mxu2 }
 0x6d9   :  { %v2549_v2 = vadd.f32 %v2548_v1, %v2536_v61 }
 0x6da   :  { %v2561_v7 = vpop.f32.mrf.mxu3 }
 0x6db   :  { %v2562_v16 = vadd.f32 %v2561_v7, %v2549_v2 }
 0x6dd   :  { %2565 = vst [vmem:[#allocation8] sm:$0x3] %v2562_v16 }
 0x6de   :  { %2576 = dma.vmem_to_hbm [thread:$0]  %s2572_s14, 32, %s2574_s17, [#allocation7]  }
 0x6e0   :  { %v2550_v17 = vpop.f32.mrf.mxu2 }
 0x6e2   :  { %v2563_v25 = vpop.f32.mrf.mxu3 }
 0x6e3   :  { %3671 = dma.done.wait [#allocation7], 32  }
 0x6e4   :  { %3672 = vsyncadd [#allocation7], 4294967264 }
 0x6e5   :  { %2581 = vsyncpa [#allocation6], 1 }
 0x6e6   :  { %2582 = vsyncpa [#allocation7], 1 }
 0x6e7   :  { %2583 = vsyncmov [#allocation4] }
 0x6ea   :  { %s2584_s8 = vpop.sfrf %2583 }
 0x6eb   :  { %p3272_p0 = scmp.ne.s32.totalorder %s2584_s8, 0 }
 0x6ed   :  { %2588 = shalt.err (%p3272_p0)  }
 0x6ee   :  { %2590 = vsyncmov [#allocation4 + $0x1] }
 0x6f1   :  { %s2591_s18 = vpop.sfrf %2590 }
 0x6f2   :  { %p3273_p1 = scmp.ne.s32.totalorder %s2591_s18, 0 }
 0x6f4   :  { %2595 = shalt.err (%p3273_p1)  }

</bundles_post_ra>
